<compile_context>
chip_gen: v7x
topology: tpu7x:2x2x1
jax: 0.10.0
libtpu: 0.0.40
codegen_flags: <defaults>
</compile_context>

<pallas_src>
import functools

import jax
import jax.numpy as jnp
from jax.experimental import pallas as pl
from jax.experimental.pallas import tpu as pltpu


def news_encoder_kernel(
    x_ref,      # [TB, TP, D]  bf16 word embeddings, TP = T + 2*pad ("same" zero pad)
    cs_ref,     # [TB, 2F]     f32  precomputed [fc1(emb1[cat]) | fc2(emb2[sub])]
    convw_ref,  # [win*D, F]   bf16 im2col-flattened conv weight
    convb_ref,  # [1, F]       f32
    attw_ref,   # [F, QP]      bf16 attention projection (Q zero-padded to QP lanes)
    attb_ref,   # [1, QP]      f32
    attq_ref,   # [1, QP]      f32  attention query (zero-padded)
    out_ref,    # [TB, OUTP]   f32  lane-dense output (3F zero-padded to OUTP lanes)
    *, window, t_out, out_pad,
):
    TB = x_ref.shape[0]
    D = x_ref.shape[2]
    F = convb_ref.shape[1]
    T = t_out

    x = x_ref[...]                                          # [TB, TP, D] bf16

    # ---- value-space im2col: window-shifted static slices, one concat (no scratch) ----
    cols = [x[:, w:w + T, :] for w in range(window)]        # window is small & static
    xcol = jnp.concatenate(cols, axis=-1).reshape(TB * T, window * D)   # bf16

    # ---- title CNN: single bf16 MXU matmul, f32 accumulation ----
    conv = jnp.dot(xcol, convw_ref[...], preferred_element_type=jnp.float32)
    h = jnp.maximum(conv + convb_ref[...], 0.0)             # [TB*T, F]; dropout = identity

    # ---- additive attention pooling over title words (bf16 MXU projection) ----
    proj = jnp.dot(h.astype(jnp.bfloat16), attw_ref[...],
                   preferred_element_type=jnp.float32)      # [TB*T, QP]
    a = jnp.tanh(proj + attb_ref[...]).reshape(TB, T, -1)   # [TB, T, QP]
    scores = jnp.sum(a * attq_ref[...], axis=2)             # [TB, T]
    scores = scores - jnp.max(scores, axis=1, keepdims=True)
    e = jnp.exp(scores)
    att = e / jnp.sum(e, axis=1, keepdims=True)             # exact softmax weights
    word_rep = jnp.sum(att[:, :, None] * h.reshape(TB, T, F), axis=1)   # [TB, F]

    # ---- single lane-dense store: concat([word, cat, sub, 0-pad], dim=1) ----
    catsub = cs_ref[...]                                    # [TB, 2F]
    pieces = [word_rep, catsub]
    if out_pad > 0:
        pieces.append(jnp.zeros((TB, out_pad), jnp.float32))
    out_ref[...] = jnp.concatenate(pieces, axis=1).astype(out_ref.dtype)


def init_params(key, *, word_dim, category_dim, subcategory_dim, query_vector_dim,
                num_filters, window, category_size, subcategory_size):
    ks = jax.random.split(key, 12)
    n = lambda k, s: (0.1 * jax.random.normal(k, s)).astype(jnp.float32)
    return {
        "emb1":   n(ks[0], (category_size, category_dim)),
        "emb2":   n(ks[1], (subcategory_size, subcategory_dim)),
        "conv_w": n(ks[2], (window, word_dim, num_filters)),
        "conv_b": n(ks[3], (1, num_filters)),
        "att_w":  n(ks[4], (num_filters, query_vector_dim)),
        "att_b":  n(ks[5], (1, query_vector_dim)),
        "att_q":  n(ks[6], (1, query_vector_dim)),
        "fc1_w":  n(ks[7], (category_dim, num_filters)),
        "fc1_b":  n(ks[8], (1, num_filters)),
        "fc2_w":  n(ks[9], (subcategory_dim, num_filters)),
        "fc2_b":  n(ks[10], (1, num_filters)),
    }


def news_encoder_forward(params, word_embedding, category_index, subcategory_index,
                         *, window, block_b=128):
    # TODO(synk): even conv windows (asymmetric "same" padding) are not supported by the
    # fused im2col path; LSTUR uses window_sizes=3.
    assert window % 2 == 1, "fused im2col path assumes an odd conv window"
    B, T, D = word_embedding.shape
    F = params["conv_b"].shape[1]
    Q = params["att_w"].shape[1]
    p = (window - 1) // 2
    QP = ((Q + 127) // 128) * 128                 # zero-pad query dim to full lanes (exact)
    OUT = 3 * F
    OUTP = ((OUT + 127) // 128) * 128             # lane-dense output width
    out_pad = OUTP - OUT

    # ---------- glue in plain JAX (one-time / tiny) ----------
    # fc1/fc2 folded into the (tiny) embedding tables: exact in eval mode (dropout = id).
    tab1 = params["emb1"] @ params["fc1_w"] + params["fc1_b"]   # [category_size, F]
    tab2 = params["emb2"] @ params["fc2_w"] + params["fc2_b"]   # [subcategory_size, F]
    cs = jnp.concatenate([tab1[category_index.astype(jnp.int32)],
                          tab2[subcategory_index.astype(jnp.int32)]],
                         axis=1).astype(jnp.float32)            # [B, 2F]

    conv_w = params["conv_w"].reshape(window * D, F).astype(jnp.bfloat16)  # [win*D, F]
    conv_b = params["conv_b"].astype(jnp.float32)
    att_w = (jnp.zeros((F, QP), jnp.float32)
             .at[:, :Q].set(params["att_w"]).astype(jnp.bfloat16))
    att_b = jnp.zeros((1, QP), jnp.float32).at[:, :Q].set(params["att_b"])
    att_q = jnp.zeros((1, QP), jnp.float32).at[:, :Q].set(params["att_q"])

    # bf16 words, "same"-conv zero padding along T done once here (T -> T + 2p).
    x = jnp.pad(word_embedding.astype(jnp.bfloat16), ((0, 0), (p, p), (0, 0)))
    TP = T + 2 * p

    # ---------- batch tiling ----------
    # Sweep block_b in {64,128,256}; on v7x keep Bp//TB >= 4 so both TensorCores get
    # whole grid steps, and re-derive VMEM (64 MiB physical) if raising further.
    TB = min(block_b, B)
    Bp = ((B + TB - 1) // TB) * TB
    if Bp != B:                                   # pad batch to a multiple of TB
        x = jnp.pad(x, ((0, Bp - B), (0, 0), (0, 0)))
        cs = jnp.pad(cs, ((0, Bp - B), (0, 0)))
    grid = (Bp // TB,)

    kernel = functools.partial(news_encoder_kernel, window=window, t_out=T,
                               out_pad=out_pad)

    flops = int(2 * Bp * T * window * D * F       # fused conv matmul
                + 2 * Bp * T * F * QP             # attention projection
                + 2 * Bp * T * QP                 # score reduction
                + 2 * Bp * T * F)                 # weighted pooling
    transcendentals = int(Bp * T * (QP + 1))      # tanh + exp
    bytes_accessed = int(x.size * 2 + cs.size * 4
                         + conv_w.size * 2 + conv_b.size * 4
                         + att_w.size * 2 + (att_b.size + att_q.size) * 4
                         + Bp * OUTP * 4)

    const = lambda shape: pl.BlockSpec(shape, lambda i: (0,) * len(shape))  # resident weights

    out = pl.pallas_call(
        kernel,
        grid=grid,
        in_specs=[
            pl.BlockSpec((TB, TP, D), lambda i: (i, 0, 0)),
            pl.BlockSpec((TB, 2 * F), lambda i: (i, 0)),
            const(conv_w.shape),
            const(conv_b.shape),
            const(att_w.shape),
            const(att_b.shape),
            const(att_q.shape),
        ],
        out_specs=pl.BlockSpec((TB, OUTP), lambda i: (i, 0)),
        out_shape=jax.ShapeDtypeStruct((Bp, OUTP), jnp.float32),
        compiler_params=pltpu.CompilerParams(
            dimension_semantics=("parallel",),
            vmem_limit_bytes=48 * 1024 * 1024),
        cost_estimate=pl.CostEstimate(flops=flops,
                                      transcendentals=transcendentals,
                                      bytes_accessed=bytes_accessed),
    )(x, cs, conv_w, conv_b, att_w, att_b, att_q)

    return out[:B, :OUT]


def _reference_forward(params, word_embedding, category_index, subcategory_index,
                       *, window):
    """Plain-JAX (f32) mirror of the PyTorch forward (eval mode)."""
    B, T, D = word_embedding.shape
    F = params["fc1_w"].shape[1]
    p = (window - 1) // 2
    xpad = jnp.pad(word_embedding, ((0, 0), (p, p), (0, 0)))
    out_len = T + 2 * p - window + 1
    conv = jnp.zeros((B, out_len, F), jnp.float32)
    for w in range(window):
        conv = conv + jnp.einsum("btd,df->btf", xpad[:, w:w + out_len, :],
                                 params["conv_w"][w],
                                 precision=jax.lax.Precision.HIGHEST)
    h = jnp.maximum(conv + params["conv_b"], 0.0)
    a = jnp.tanh(jnp.einsum("btf,fq->btq", h, params["att_w"],
                            precision=jax.lax.Precision.HIGHEST) + params["att_b"])
    scores = jnp.sum(a * params["att_q"], axis=2)
    weights = jax.nn.softmax(scores, axis=1)
    word_rep = jnp.sum(weights[:, :, None] * h, axis=1)
    cat_rep = params["emb1"][category_index.astype(jnp.int32)] @ params["fc1_w"] + params["fc1_b"]
    sub_rep = params["emb2"][subcategory_index.astype(jnp.int32)] @ params["fc2_w"] + params["fc2_b"]
    return jnp.concatenate([word_rep, cat_rep, sub_rep], axis=1)


if __name__ == "__main__":
    # Small, module-consistent shapes; block_b=16 with B=24 -> padded batch of 32,
    # 2 grid steps, exercising both the batch pipeline and the pad/slice-off path.
    B = 24                 # batch of news items
    T = 16                 # title_word_size
    D = 32                 # word_dim
    CD, SD = 16, 16        # category_dim, subcategory_dim
    Q = 16                 # query_vector_dim
    F = 32                 # num_filters
    WIN = 3                # window_sizes
    CAT_SZ, SUBCAT_SZ = 10, 24

    key = jax.random.PRNGKey(0)
    kp, kx = jax.random.split(key)
    params = init_params(kp, word_dim=D, category_dim=CD, subcategory_dim=SD,
                         query_vector_dim=Q, num_filters=F, window=WIN,
                         category_size=CAT_SZ, subcategory_size=SUBCAT_SZ)

    word_embedding = jax.random.normal(kx, (B, T, D), dtype=jnp.float32)
    category_index = jnp.arange(B, dtype=jnp.int32) % CAT_SZ
    subcategory_index = (jnp.arange(B, dtype=jnp.int32) * 3) % SUBCAT_SZ

    out = news_encoder_forward(params, word_embedding, category_index,
                               subcategory_index, window=WIN, block_b=16)
    out = jax.block_until_ready(out)

    ref = _reference_forward(params, word_embedding, category_index,
                             subcategory_index, window=WIN)
    assert out.shape == (B, 3 * F)
    # bf16 MXU operands (conv + attention projection) drift slightly vs the f32 reference.
    assert jnp.allclose(out, ref, rtol=3e-2, atol=3e-2), \
        f"max abs diff {float(jnp.max(jnp.abs(out - ref)))}"
    print("KERNEL_OK")
</pallas_src>

<mosaic_0001>
module attributes {stable_mosaic.version = 11 : i64} {
  func.func @news_encoder_kernel(%arg0: i32, %arg1: memref<16x18x32xbf16, #tpu.memory_space<vmem>>, %arg2: memref<16x64xf32, #tpu.memory_space<vmem>>, %arg3: memref<96x32xbf16, #tpu.memory_space<vmem>>, %arg4: memref<1x32xf32, #tpu.memory_space<vmem>>, %arg5: memref<32x128xbf16, #tpu.memory_space<vmem>>, %arg6: memref<1x128xf32, #tpu.memory_space<vmem>>, %arg7: memref<1x128xf32, #tpu.memory_space<vmem>>, %arg8: memref<16x128xf32, #tpu.memory_space<vmem>>) attributes {dimension_semantics = [#tpu.dimension_semantics<parallel>], iteration_bounds = array<i64: 2>, scalar_prefetch = 0 : i64, scratch_operands = 0 : i64, tpu.core_type = #tpu.core_type<tc>, window_params = [{transform_indices = @transform_0, window_bounds = array<i64: 16, 18, 32>}, {transform_indices = @transform_1, window_bounds = array<i64: 16, 64>}, {pipeline_mode = #tpu.pipeline_mode<synchronous>, transform_indices = @transform_2, window_bounds = array<i64: 96, 32>}, {pipeline_mode = #tpu.pipeline_mode<synchronous>, transform_indices = @transform_3, window_bounds = array<i64: 1, 32>}, {pipeline_mode = #tpu.pipeline_mode<synchronous>, transform_indices = @transform_4, window_bounds = array<i64: 32, 128>}, {pipeline_mode = #tpu.pipeline_mode<synchronous>, transform_indices = @transform_5, window_bounds = array<i64: 1, 128>}, {pipeline_mode = #tpu.pipeline_mode<synchronous>, transform_indices = @transform_6, window_bounds = array<i64: 1, 128>}, {transform_indices = @transform_7, window_bounds = array<i64: 16, 128>}]} {
    %c0 = arith.constant 0 : index
    %c0_0 = arith.constant 0 : index
    %c0_1 = arith.constant 0 : index
    %0 = vector.load %arg1[%c0, %c0_0, %c0_1] : memref<16x18x32xbf16, #tpu.memory_space<vmem>>, vector<16x18x32xbf16>
    %1 = vector.extract_strided_slice %0 {offsets = [0, 0, 0], sizes = [16, 16, 32], strides = [1, 1, 1]} : vector<16x18x32xbf16> to vector<16x16x32xbf16>
    %2 = vector.extract_strided_slice %0 {offsets = [0, 1, 0], sizes = [16, 16, 32], strides = [1, 1, 1]} : vector<16x18x32xbf16> to vector<16x16x32xbf16>
    %3 = vector.extract_strided_slice %0 {offsets = [0, 2, 0], sizes = [16, 16, 32], strides = [1, 1, 1]} : vector<16x18x32xbf16> to vector<16x16x32xbf16>
    %4 = tpu.concatenate %1, %2, %3 in 2 : vector<16x16x32xbf16>, vector<16x16x32xbf16>, vector<16x16x32xbf16> -> vector<16x16x96xbf16>
    %5 = vector.shape_cast %4 : vector<16x16x96xbf16> to vector<256x96xbf16>
    %c0_2 = arith.constant 0 : index
    %c0_3 = arith.constant 0 : index
    %6 = vector.load %arg3[%c0_2, %c0_3] : memref<96x32xbf16, #tpu.memory_space<vmem>>, vector<96x32xbf16>
    %cst = arith.constant dense<0.000000e+00> : vector<256x32xf32>
    %7 = tpu.matmul %5, %6, %cst {dimension_numbers = #tpu.dot_dimension_numbers<[1], [0], [0], [1], [0, 0, 1, 1], [], []>} : vector<256x96xbf16>, vector<96x32xbf16>, vector<256x32xf32> -> vector<256x32xf32>
    %c0_4 = arith.constant 0 : index
    %c0_5 = arith.constant 0 : index
    %8 = vector.load %arg4[%c0_4, %c0_5] : memref<1x32xf32, #tpu.memory_space<vmem>>, vector<1x32xf32>
    %9 = vector.broadcast %8 : vector<1x32xf32> to vector<256x32xf32>
    %10 = arith.addf %7, %9 : vector<256x32xf32>
    %cst_6 = arith.constant 0.000000e+00 : f32
    %11 = vector.broadcast %cst_6 : f32 to vector<256x32xf32>
    %12 = arith.maximumf %10, %11 : vector<256x32xf32>
    %13 = arith.truncf %12 : vector<256x32xf32> to vector<256x32xbf16>
    %c0_7 = arith.constant 0 : index
    %c0_8 = arith.constant 0 : index
    %14 = vector.load %arg5[%c0_7, %c0_8] : memref<32x128xbf16, #tpu.memory_space<vmem>>, vector<32x128xbf16>
    %cst_9 = arith.constant dense<0.000000e+00> : vector<256x128xf32>
    %15 = tpu.matmul %13, %14, %cst_9 {dimension_numbers = #tpu.dot_dimension_numbers<[1], [0], [0], [1], [0, 0, 1, 1], [], []>} : vector<256x32xbf16>, vector<32x128xbf16>, vector<256x128xf32> -> vector<256x128xf32>
    %c0_10 = arith.constant 0 : index
    %c0_11 = arith.constant 0 : index
    %16 = vector.load %arg6[%c0_10, %c0_11] : memref<1x128xf32, #tpu.memory_space<vmem>>, vector<1x128xf32>
    %17 = vector.broadcast %16 : vector<1x128xf32> to vector<256x128xf32>
    %18 = arith.addf %15, %17 : vector<256x128xf32>
    %19 = math.tanh %18 : vector<256x128xf32>
    %20 = vector.shape_cast %19 : vector<256x128xf32> to vector<16x16x128xf32>
    %c0_12 = arith.constant 0 : index
    %c0_13 = arith.constant 0 : index
    %21 = vector.load %arg7[%c0_12, %c0_13] : memref<1x128xf32, #tpu.memory_space<vmem>>, vector<1x128xf32>
    %22 = vector.shape_cast %21 : vector<1x128xf32> to vector<1x1x128xf32>
    %23 = vector.broadcast %22 : vector<1x1x128xf32> to vector<16x16x128xf32>
    %24 = arith.mulf %20, %23 : vector<16x16x128xf32>
    %cst_14 = arith.constant dense<0.000000e+00> : vector<16x16xf32>
    %25 = vector.multi_reduction <add>, %24, %cst_14 [2] : vector<16x16x128xf32> to vector<16x16xf32>
    %cst_15 = arith.constant dense<0xFF800000> : vector<16xf32>
    %26 = vector.multi_reduction <maximumf>, %25, %cst_15 [1] : vector<16x16xf32> to vector<16xf32>
    %27 = vector.shape_cast %26 : vector<16xf32> to vector<16x1xf32>
    %28 = vector.broadcast %27 : vector<16x1xf32> to vector<16x16xf32>
    %29 = arith.subf %25, %28 : vector<16x16xf32>
    %30 = math.exp %29 : vector<16x16xf32>
    %cst_16 = arith.constant dense<0.000000e+00> : vector<16xf32>
    %31 = vector.multi_reduction <add>, %30, %cst_16 [1] : vector<16x16xf32> to vector<16xf32>
    %32 = vector.shape_cast %31 : vector<16xf32> to vector<16x1xf32>
    %33 = vector.broadcast %32 : vector<16x1xf32> to vector<16x16xf32>
    %34 = arith.divf %30, %33 : vector<16x16xf32>
    %35 = vector.shape_cast %34 : vector<16x16xf32> to vector<16x16x1xf32>
    %36 = vector.shape_cast %12 : vector<256x32xf32> to vector<16x16x32xf32>
    %37 = vector.broadcast %35 : vector<16x16x1xf32> to vector<16x16x32xf32>
    %38 = arith.mulf %37, %36 : vector<16x16x32xf32>
    %cst_17 = arith.constant dense<0.000000e+00> : vector<16x32xf32>
    %39 = vector.multi_reduction <add>, %38, %cst_17 [1] : vector<16x16x32xf32> to vector<16x32xf32>
    %c0_18 = arith.constant 0 : index
    %c0_19 = arith.constant 0 : index
    %40 = vector.load %arg2[%c0_18, %c0_19] : memref<16x64xf32, #tpu.memory_space<vmem>>, vector<16x64xf32>
    %cst_20 = arith.constant 0.000000e+00 : f32
    %41 = vector.broadcast %cst_20 : f32 to vector<16x32xf32>
    %42 = tpu.concatenate %39, %40, %41 in 1 : vector<16x32xf32>, vector<16x64xf32>, vector<16x32xf32> -> vector<16x128xf32>
    %c0_21 = arith.constant 0 : index
    %c0_22 = arith.constant 0 : index
    %43 = vector.load %arg8[%c0_21, %c0_22] : memref<16x128xf32, #tpu.memory_space<vmem>>, vector<16x128xf32>
    tpu.vector_store %arg8[%c0_21, %c0_22], %42 {strides = array<i32>} : memref<16x128xf32, #tpu.memory_space<vmem>>, vector<16x128xf32>,
    return
  }
  func.func @transform_0(%arg0: i32) -> (i32, i32, i32) {
    %c0_i32 = arith.constant 0 : i32
    %c0_i32_0 = arith.constant 0 : i32
    %c0_i32_1 = arith.constant 0 : i32
    return %arg0, %c0_i32, %c0_i32_0 : i32, i32, i32
  }
  func.func @transform_1(%arg0: i32) -> (i32, i32) {
    %c0_i32 = arith.constant 0 : i32
    %c0_i32_0 = arith.constant 0 : i32
    return %arg0, %c0_i32 : i32, i32
  }
  func.func @transform_2(%arg0: i32) -> (i32, i32) {
    %c0_i32 = arith.constant 0 : i32
    %c0_i32_0 = arith.constant 0 : i32
    %c0_i32_1 = arith.constant 0 : i32
    return %c0_i32, %c0_i32_0 : i32, i32
  }
  func.func @transform_3(%arg0: i32) -> (i32, i32) {
    %c0_i32 = arith.constant 0 : i32
    %c0_i32_0 = arith.constant 0 : i32
    %c0_i32_1 = arith.constant 0 : i32
    return %c0_i32, %c0_i32_0 : i32, i32
  }
  func.func @transform_4(%arg0: i32) -> (i32, i32) {
    %c0_i32 = arith.constant 0 : i32
    %c0_i32_0 = arith.constant 0 : i32
    %c0_i32_1 = arith.constant 0 : i32
    return %c0_i32, %c0_i32_0 : i32, i32
  }
  func.func @transform_5(%arg0: i32) -> (i32, i32) {
    %c0_i32 = arith.constant 0 : i32
    %c0_i32_0 = arith.constant 0 : i32
    %c0_i32_1 = arith.constant 0 : i32
    return %c0_i32, %c0_i32_0 : i32, i32
  }
  func.func @transform_6(%arg0: i32) -> (i32, i32) {
    %c0_i32 = arith.constant 0 : i32
    %c0_i32_0 = arith.constant 0 : i32
    %c0_i32_1 = arith.constant 0 : i32
    return %c0_i32, %c0_i32_0 : i32, i32
  }
  func.func @transform_7(%arg0: i32) -> (i32, i32) {
    %c0_i32 = arith.constant 0 : i32
    %c0_i32_0 = arith.constant 0 : i32
    return %arg0, %c0_i32 : i32, i32
  }
}

</mosaic_0001>

<bundles_post_ra>
// kernel: tpu_custom_call.1
= control target key start
LH: loop header
LB: loop body
LE: loop exit
PB: predicated region body
PF: predicated region fallthrough
CT: control target
= control target key end

     0   :  { %12 = vsyncpa [#allocation3], 0  ;;  %s4626_s0 = inlined_call_operand.vmem [shape: bf16[32,18,32], index: 0, kind: input, shape index: {}]   ;;  %s4627_s1 = inlined_call_operand.vmem [shape: f32[32,64], index: 1, kind: input, shape index: {}]   ;;  %s4628_s2 = inlined_call_operand.vmem [shape: bf16[96,32], index: 2, kind: input, shape index: {}]   ;;  %s4629_s3 = inlined_call_operand.vmem [shape: f32[1,32], index: 3, kind: input, shape index: {}]   ;;  %s4630_s4 = inlined_call_operand.vmem [shape: bf16[32,128], index: 4, kind: input, shape index: {}]   ;;  %s4631_s5 = inlined_call_operand.vmem [shape: f32[1,128], index: 5, kind: input, shape index: {}]   ;;  %s4632_s6 = inlined_call_operand.vmem [shape: f32[1,128], index: 6, kind: input, shape index: {}]   ;;  %s4633_s7 = inlined_call_operand.hbm [shape: f32[32,128], index: 7, kind: output, shape index: {}]  }
   0x1   :  { %14 = vsyncpa [#allocation3 + $0x1], 0  ;;  %s3369_s24 = smov 0   ;;  %s3371_s25 = smov 0  }
   0x2   :  { %s3373_s26 = smov 0   ;;  %s3375_s27 = smov 0  }
   0x3 LB: > { %s3390_s28 = sadd.s32 4294967295, %s3321_s27   ;;  %s2802_s29 = sadd.s32 4294967294, %s3321_s27   ;;  %s3321_s27 = sphi %s3375_s27, %s4814_s27   ;;  %s3317_s26 = sphi %s3373_s26, %s4813_s26   ;;  %s3313_s25 = sphi %s3371_s25, %s4812_s25   ;;  %s3309_s24 = sphi %s3369_s24, %s4811_s24  }
   0x4   : > { %s3394_s30 = sadd.s32 1, %s3321_s27   ;;  %s184_s8 = sadd.s32 1, %s3317_s26 }
   0x5   : > { %s181_s9 = ssub.s32 %s3321_s27, %s3394_s30  ;;  %p194_p0 = scmp.ne.s32.totalorder %s3317_s26, %s3313_s25 }
   0x6   : > { %p182_p1 = scmp.eq.s32.totalorder %s181_s9, 0  ;;  %p195_p2 = scmp.eq.s32.totalorder %s3390_s28, 1 }
   0x7   : > { %p200_p3 = scmp.ne.s32.totalorder %s3313_s25, %s3309_s24  ;;  %p201_p4 = scmp.eq.s32.totalorder %s2802_s29, 1 }
   0x8   : > { %s3405_s10 = scalar_select %p182_p1, %s3317_s26, %s184_s8  }
   0x9   : > { %p3407_p5 = por %p195_p2, %p194_p0  ;;  %p3411_p6 = por %p201_p4, %p200_p3 }
   0xa   : > { %p2805_p7 = scmp.ge.s32.totalorder %s3321_s27, 1  ;;  %p253_p8 = scmp.lt.s32.totalorder %s3321_s27, 3 }
   0xc   : > { %p254_p9 = pnand %p2805_p7, %p253_p8 }
   0xe   : > { %257 = sbr.rel (%p254_p9) target bundleno = 1502 (0x5de), region = 48 }
  0x15   : > { %s2807_s13 = sshll.u32 %s3390_s28, 4  ;;  %v3091_v0 = vld [vmem:[%s4628_s2] sm:$0xff]   ;;  %v3092_v1 = vld [vmem:[%s4628_s2 + $0x8] sm:$0xff]   ;;  %v3093_v2 = vld [vmem:[%s4628_s2 + $0x10] sm:$0xff]   ;;  %vm707_vm0 = vcmask 1046528   ;;  %s3323_s14 = smov 64  }
  0x16   : > { %p292_p10 = scmp.lt.s32.totalorder %s2807_s13, 31  ;;  %2932 = vmatprep.subr.bf16.mxu0 %v3091_v0  ;;  %vm482_vm1 = vsmask.f32 7424  ;;  %v3094_v3 = vld [vmem:[%s4628_s2 + $0x18] sm:$0xff]   ;;  %v3095_v7 = vld [vmem:[%s4628_s2 + $0x20] sm:$0xff]   ;;  %v3096_v23 = vld [vmem:[%s4628_s2 + $0x28] sm:$0xff]  }
  0x17   : > { %2933 = vmatpush3.bf16.msra.mxu0 %v3091_v0  ;;  %s3324_s17 = smov 32   ;;  %vm788_vm2 = vcmask 261120   ;;  %vm821_vm3 = vcmask 523264   ;;  %vm909_vm4 = vcmask 785408   ;;  %vm1561_vm5 = vcmask 130112  }
  0x18   : > { %s4816_s13 = smov (!%p292_p10, %s2807_s13), 31  ;;  %2934 = vmatprep.subr.bf16.mxu0 %v3092_v1  ;;  %vm1698_vm6 = vcmask 1041409   ;;  %vm1700_vm7 = vcmask 1042434   ;;  %vm1702_vm8 = vcmask 1043459   ;;  %vm1704_vm9 = vcmask 1044484  }
  0x19   : > { %s3012_s20 = smul.u32 12, %s4816_s13  ;;  %vm1706_vm10 = vcmask 1045509   ;;  %vm1708_vm11 = vcmask 1046534   ;;  %vm1710_vm12 = vcmask 1047559   ;;  %vm1721_vm13 = vcmask 130048  }
  0x1b   : > { %s3430_s23 = scalar_lea.vmem %s4626_s0, %s3012_s20  ;;  %2935 = vmatpush3.bf16.msra.mxu0 %v3092_v1 }
  0x1c   : > { %2936 = vmatprep.subr.bf16.mxu0 %v3093_v2  ;;  %v3436_v4 = vld [vmem:[%s3430_s23] sm:$0xff]   ;;  %v3060_v5 = vld [vmem:[%s3430_s23 + $0x8] ss:$0 sps:$4 sm:$0x11]   ;;  %v3440_v6 = vld [vmem:[%s3430_s23 + $0xc] sm:$0xff]  }
  0x1d   : > { %v708_v8 = vrot.slane %v3436_v4, 1  ;;  %v709_v9 = vrot.slane %v3060_v5, 1  ;;  %v484_v10 = vshrl.u32 %v3436_v4, 16  ;;  %v486_v11 = vshll.u32 %v3436_v4, 16  ;;  %v3455_v22 = vld [vmem:[%s3430_s23 + $0x24] sm:$0xff]   ;;  %v3465_v31 = vld [vmem:[%s3430_s23 + $0x18] sm:$0xff]  }
  0x1e   : > { %v491_v12 = vshll.u32 %v3060_v5, 16  ;;  %v3062_v13 = vld [vmem:[%s3430_s23 + $0x14] ss:$0 sps:$4 sm:$0x11]   ;;  %v711_v14 = vrot.slane %v3440_v6, 1  ;;  %v496_v15 = vshrl.u32 %v3440_v6, 16 }
  0x1f   : > { %2937 = vmatpush3.bf16.msra.mxu0 %v3093_v2  ;;  %v710_v16 = vsel %vm707_vm0, %v708_v8, %v709_v9  ;;  %v488_v17 = vrot.slane %v486_v11, 1  ;;  %v498_v18 = vshll.u32 %v3440_v6, 16  ;;  %v712_v20 = vrot.slane %v3062_v13, 1  ;;  %v3064_v26 = vld [vmem:[%s3430_s23 + $0x2c] ss:$0 sps:$4 sm:$0x11]  }
  0x20   : > { %2938 = vmatprep.subr.bf16.mxu0 %v3094_v3  ;;  %756 = vrot.lane.b32.xlu1 %v710_v16, %s3323_s14  ;;  %v493_v19 = vrot.slane %v491_v12, 1  ;;  %v503_v21 = vshll.u32 %v3062_v13, 16  ;;  %v520_v29 = vshrl.u32 %v3455_v22, 16  ;;  %v522_v30 = vshll.u32 %v3455_v22, 16  ;;  %v3470_v36 = vld [vmem:[%s3430_s23 + $0x3c] sm:$0xff]   ;;  %v3479_v45 = vld [vmem:[%s3430_s23 + $0x30] sm:$0xff]  }
  0x21   : > { %v489_v24 = vor.u32 %v488_v17, %v484_v10  ;;  %v500_v25 = vrot.slane %v498_v18, 1  ;;  %v713_v27 = vsel %vm707_vm0, %v711_v14, %v712_v20  ;;  %v527_v34 = vshll.u32 %v3064_v26, 16  ;;  %v3066_v35 = vld [vmem:[%s3430_s23 + $0x20] ss:$0 sps:$4 sm:$0x11]   ;;  %v3494_v63 = vld [vmem:[%s3430_s23 + $0x54] sm:$0xff]  }
  0x22   : > { %v505_v28 = vrot.slane %v503_v21, 1  ;;  %v524_v37 = vrot.slane %v522_v30, 1  ;;  %v508_v38 = vshrl.u32 %v3465_v31, 16  ;;  %v510_v39 = vshll.u32 %v3465_v31, 16  ;;  %v3497_v5 = vld [vmem:[%s3430_s23 + $0x48] sm:$0xff]  }
  0x23   : > { %2939 = vmatpush3.bf16.msra.mxu0 %v3094_v3  ;;  %v494_v32 = vsel %vm482_vm1, %v489_v24, %v493_v19  ;;  %v501_v33 = vor.u32 %v500_v25, %v496_v15  ;;  %v717_v40 = vrot.slane %v3455_v22, 1  ;;  %v529_v42 = vrot.slane %v527_v34, 1  ;;  %v3068_v50 = vld [vmem:[%s3430_s23 + $0x44] ss:$0 sps:$4 sm:$0x11]   ;;  %v3515_v24 = vld [vmem:[%s3430_s23 + $0x6c] sm:$0xff]  }
  0x24   : > { %2940 = vmatprep.subr.bf16.mxu0 %v3095_v7  ;;  %675 = vrot.lane.b32.xlu0 %v494_v32, %s3324_s17  ;;  %v515_v43 = vshll.u32 %v3066_v35, 16  ;;  %v718_v44 = vrot.slane %v3064_v26, 1  ;;  %v525_v46 = vor.u32 %v524_v37, %v520_v29  ;;  %v512_v47 = vrot.slane %v510_v39, 1  ;;  %v3070_v59 = vld [vmem:[%s3430_s23 + $0x38] ss:$0 sps:$4 sm:$0x11]  }
  0x25   : > { %758 = vrot.lane.b32.xlu1 %v713_v27, %s3323_s14  ;;  %v506_v41 = vsel %vm482_vm1, %v501_v33, %v505_v28  ;;  %v714_v48 = vrot.slane %v3465_v31, 1  ;;  %v544_v51 = vshrl.u32 %v3470_v36, 16  ;;  %v546_v52 = vshll.u32 %v3470_v36, 16  ;;  %v3072_v8 = vld [vmem:[%s3430_s23 + $0x5c] ss:$0 sps:$4 sm:$0x11]  }
  0x26   : > { %v517_v49 = vrot.slane %v515_v43, 1  ;;  %v530_v53 = vsel %vm482_vm1, %v525_v46, %v529_v42  ;;  %v513_v54 = vor.u32 %v512_v47, %v508_v38  ;;  %v715_v55 = vrot.slane %v3066_v35, 1  ;;  %v3074_v18 = vld [vmem:[%s3430_s23 + $0x50] ss:$0 sps:$4 sm:$0x11]   ;;  %v3532_v47 = vld [vmem:[%s3430_s23 + $0x84] sm:$0xff]  }
  0x27   : > { %2941 = vmatpush3.bf16.msra.mxu0 %v3095_v7  ;;  %v532_v56 = vshrl.u32 %v3479_v45, 16  ;;  %v548_v57 = vrot.slane %v546_v52, 1  ;;  %v551_v58 = vshll.u32 %v3068_v50, 16  ;;  %v534_v60 = vshll.u32 %v3479_v45, 16 }
  0x28   : > { %2942 = vmatprep.subr.bf16.mxu0 %v3096_v23  ;;  %677 = vrot.lane.b32.xlu0 %v506_v41, %s3324_s17  ;;  %v518_v61 = vsel %vm482_vm1, %v513_v54, %v517_v49  ;;  %v719_v62 = vsel %vm707_vm0, %v717_v40, %v718_v44  ;;  %v539_v3 = vshll.u32 %v3070_v59, 16  ;;  %v723_v7 = vrot.slane %v3470_v36, 1  ;;  %v3076_v33 = vld [vmem:[%s3430_s23 + $0x68] ss:$0 sps:$4 sm:$0x11]  }
  0x29   : > { %681 = vrot.lane.b32.xlu1 %v530_v53, %s3324_s17  ;;  %v549_v0 = vor.u32 %v548_v57, %v544_v51  ;;  %v553_v1 = vrot.slane %v551_v58, 1  ;;  %v536_v2 = vrot.slane %v534_v60, 1  ;;  %v716_v9 = vsel %vm707_vm0, %v714_v48, %v715_v55  ;;  %v3078_v42 = vld [vmem:[%s3430_s23 + $0x74] ss:$0 sps:$4 sm:$0x11]   ;;  %v3540_v55 = vld [vmem:[%s3430_s23 + $0x78] sm:$0xff]  }
  0x2a   : > { %v541_v11 = vrot.slane %v539_v3, 1  ;;  %v724_v12 = vrot.slane %v3068_v50, 1  ;;  %v568_v14 = vshrl.u32 %v3494_v63, 16  ;;  %v570_v15 = vshll.u32 %v3494_v63, 16 }
  0x2b   : > { %2943 = vmatpush3.bf16.msra.mxu0 %v3096_v23  ;;  %v537_v10 = vor.u32 %v536_v2, %v532_v56  ;;  %v554_v13 = vsel %vm482_vm1, %v549_v0, %v553_v1  ;;  %v575_v16 = vshll.u32 %v3072_v8, 16  ;;  %v720_v17 = vrot.slane %v3479_v45, 1  ;;  %v3512_v23 = vld [vmem:[%s3430_s23 + $0x60] sm:$0xff]  }
  0x2c   : > { %679 = vrot.lane.b32.xlu0 %v518_v61, %s3324_s17  ;;  %v558_v19 = vshll.u32 %v3497_v5, 16  ;;  %v721_v20 = vrot.slane %v3070_v59, 1  ;;  %v572_v21 = vrot.slane %v570_v15, 1  ;;  %v556_v26 = vshrl.u32 %v3497_v5, 16 }
  0x2d   : > { %762 = vrot.lane.b32.xlu1 %v719_v62, %s3323_s14  ;;  %v542_v25 = vsel %vm482_vm1, %v537_v10, %v541_v11  ;;  %v563_v28 = vshll.u32 %v3074_v18, 16  ;;  %v725_v29 = vsel %vm707_vm0, %v723_v7, %v724_v12  ;;  %v577_v32 = vrot.slane %v575_v16, 1  ;;  %v3082_v59 = vld [vmem:[%s3430_s23 + $0x8c] ss:$0 sps:$4 sm:$0x11]   ;;  %v3554_v12 = vld [vmem:[%s3430_s23 + $0x9c] sm:$0xff]  }
  0x2e   : > { %v560_v27 = vrot.slane %v558_v19, 1  ;;  %v573_v30 = vor.u32 %v572_v21, %v568_v14  ;;  %v722_v34 = vsel %vm707_vm0, %v720_v17, %v721_v20  ;;  %v729_v35 = vrot.slane %v3494_v63, 1  ;;  %v3080_v2 = vld [vmem:[%s3430_s23 + $0x80] ss:$0 sps:$4 sm:$0x11]   ;;  %v3562_v20 = vld [vmem:[%s3430_s23 + $0x90] sm:$0xff]  }
  0x2f   : > { %v582_v37 = vshll.u32 %v3512_v23, 16  ;;  %v594_v38 = vshll.u32 %v3515_v24, 16  ;;  %v565_v40 = vrot.slane %v563_v28, 1  ;;  %v730_v41 = vrot.slane %v3072_v8, 1 }
  0x30   : > { %760 = vrot.lane.b32.xlu0 %v716_v9, %s3323_s14  ;;  %v561_v39 = vor.u32 %v560_v27, %v556_v26  ;;  %v592_v43 = vshrl.u32 %v3515_v24, 16  ;;  %v578_v44 = vsel %vm482_vm1, %v573_v30, %v577_v32  ;;  %v726_v48 = vrot.slane %v3497_v5, 1  ;;  %v3086_v26 = vld [vmem:[%s3430_s23 + $0xa4] ss:$0 sps:$4 sm:$0x11]  }
  0x31   : > { %685 = vrot.lane.b32.xlu1 %v554_v13, %s3324_s17  ;;  %v596_v46 = vrot.slane %v594_v38, 1  ;;  %v599_v49 = vshll.u32 %v3078_v42, 16  ;;  %v727_v50 = vrot.slane %v3074_v18, 1  ;;  %v580_v51 = vshrl.u32 %v3512_v23, 16 }
  0x32   : > { %v584_v52 = vrot.slane %v582_v37, 1  ;;  %v587_v53 = vshll.u32 %v3076_v33, 16  ;;  %v566_v54 = vsel %vm482_vm1, %v561_v39, %v565_v40  ;;  %v731_v56 = vsel %vm707_vm0, %v729_v35, %v730_v41  ;;  %v3084_v28 = vld [vmem:[%s3430_s23 + $0x98] ss:$0 sps:$4 sm:$0x11]  }
  0x33   : > { %v597_v57 = vor.u32 %v596_v46, %v592_v43  ;;  %v601_v58 = vrot.slane %v599_v49, 1  ;;  %v618_v60 = vshll.u32 %v3532_v47, 16  ;;  %v735_v61 = vrot.slane %v3515_v24, 1  ;;  %v3576_v41 = vld [vmem:[%s3430_s23 + $0xb4] sm:$0xff]  }
  0x34   : > { %683 = vrot.lane.b32.xlu0 %v542_v25, %s3324_s17  ;;  %v728_v62 = vsel %vm707_vm0, %v726_v48, %v727_v50  ;;  %v585_v0 = vor.u32 %v584_v52, %v580_v51  ;;  %v589_v1 = vrot.slane %v587_v53, 1  ;;  %v736_v3 = vrot.slane %v3078_v42, 1  ;;  %v3584_v50 = vld [vmem:[%s3430_s23 + $0xa8] sm:$0xff]  }
  0x35   : > { %766 = vrot.lane.b32.xlu1 %v725_v29, %s3323_s14  ;;  %v606_v7 = vshll.u32 %v3540_v55, 16  ;;  %v616_v8 = vshrl.u32 %v3532_v47, 16  ;;  %v623_v9 = vshll.u32 %v3082_v59, 16  ;;  %v602_v10 = vsel %vm482_vm1, %v597_v57, %v601_v58 }
  0x36   : > { %v620_v11 = vrot.slane %v618_v60, 1  ;;  %v732_v13 = vrot.slane %v3512_v23, 1  ;;  %v733_v14 = vrot.slane %v3076_v33, 1  ;;  %v604_v15 = vshrl.u32 %v3540_v55, 16 }
  0x37   : > { %v590_v16 = vsel %vm482_vm1, %v585_v0, %v589_v1  ;;  %v608_v17 = vrot.slane %v606_v7, 1  ;;  %v611_v18 = vshll.u32 %v3080_v2, 16  ;;  %v625_v19 = vrot.slane %v623_v9, 1 }
  0x38   : > { %764 = vrot.lane.b32.xlu0 %v722_v34, %s3323_s14  ;;  %v737_v21 = vsel %vm707_vm0, %v735_v61, %v736_v3  ;;  %v621_v25 = vor.u32 %v620_v11, %v616_v8  ;;  %v642_v27 = vshll.u32 %v3554_v12, 16  ;;  %v734_v29 = vsel %vm707_vm0, %v732_v13, %v733_v14 }
  0x39   : > { %689 = vrot.lane.b32.xlu1 %v578_v44, %s3324_s17  ;;  %v741_v30 = vrot.slane %v3532_v47, 1  ;;  %v609_v32 = vor.u32 %v608_v17, %v604_v15  ;;  %v613_v33 = vrot.slane %v611_v18, 1  ;;  %v742_v34 = vrot.slane %v3082_v59, 1 }
  0x3a   : > { %v630_v35 = vshll.u32 %v3562_v20, 16  ;;  %v626_v37 = vsel %vm482_vm1, %v621_v25, %v625_v19  ;;  %v640_v38 = vshrl.u32 %v3554_v12, 16  ;;  %v644_v39 = vrot.slane %v642_v27, 1 }
  0x3b   : > { %v647_v40 = vshll.u32 %v3086_v26, 16  ;;  %v738_v42 = vrot.slane %v3540_v55, 1  ;;  %v739_v43 = vrot.slane %v3080_v2, 1  ;;  %v635_v44 = vshll.u32 %v3084_v28, 16 }
  0x3c   : > { %687 = vrot.lane.b32.xlu0 %v566_v54, %s3324_s17  ;;  %v614_v46 = vsel %vm482_vm1, %v609_v32, %v613_v33  ;;  %v628_v48 = vshrl.u32 %v3562_v20, 16  ;;  %v632_v49 = vrot.slane %v630_v35, 1  ;;  %v743_v51 = vsel %vm707_vm0, %v741_v30, %v742_v34  ;;  %v3090_v54 = vld [vmem:[%s3430_s23 + $0xbc] ss:$0 sps:$4 sm:$0x11]  }
  0x3d   : > { %770 = vrot.lane.b32.xlu1 %v731_v56, %s3323_s14  ;;  %v645_v52 = vor.u32 %v644_v39, %v640_v38  ;;  %v649_v53 = vrot.slane %v647_v40, 1  ;;  %v666_v56 = vshll.u32 %v3576_v41, 16  ;;  %v740_v57 = vsel %vm707_vm0, %v738_v42, %v739_v43 }
  0x3e   : > { %v637_v58 = vrot.slane %v635_v44, 1  ;;  %v633_v59 = vor.u32 %v632_v49, %v628_v48  ;;  %v747_v60 = vrot.slane %v3554_v12, 1  ;;  %v748_v61 = vrot.slane %v3086_v26, 1 }
  0x3f   : > { %v654_v0 = vshll.u32 %v3584_v50, 16  ;;  %v650_v1 = vsel %vm482_vm1, %v645_v52, %v649_v53  ;;  %v664_v2 = vshrl.u32 %v3576_v41, 16  ;;  %v668_v3 = vrot.slane %v666_v56, 1 }
  0x40   : > { %768 = vrot.lane.b32.xlu0 %v728_v62, %s3323_s14  ;;  %v3088_v62 = vld [vmem:[%s3430_s23 + $0xb0] ss:$0 sps:$4 sm:$0x11]   ;;  %v671_v7 = vshll.u32 %v3090_v54, 16  ;;  %v744_v8 = vrot.slane %v3562_v20, 1  ;;  %v745_v9 = vrot.slane %v3084_v28, 1  ;;  %v749_v15 = vsel %vm707_vm0, %v747_v60, %v748_v61 }
  0x41   : > { %693 = vrot.lane.b32.xlu1 %v602_v10, %s3324_s17  ;;  %v638_v10 = vsel %vm482_vm1, %v633_v59, %v637_v58  ;;  %v652_v11 = vshrl.u32 %v3584_v50, 16  ;;  %v656_v13 = vrot.slane %v654_v0, 1  ;;  %v659_v14 = vshll.u32 %v3088_v62, 16  ;;  %s2891_s23 = sshll.u32 %s3390_s28, 8 }
  0x42   : > { %v673_v17 = vrot.slane %v671_v7, 1  ;;  %v746_v18 = vsel %vm707_vm0, %v744_v8, %v745_v9  ;;  %v753_v26 = vrot.slane %v3576_v41, 1  ;;  %v754_v27 = vrot.slane %v3090_v54, 1  ;;  %s4579_s9 = scalar_lea.hbm %s4633_s7, %s2891_s23 }
  0x43   : > { %v657_v19 = vor.u32 %v656_v13, %v652_v11  ;;  %v751_v30 = vrot.slane %v3088_v62, 1 }
  0x44   : > { %691 = vrot.lane.b32.xlu0 %v590_v16, %s3324_s17  ;;  %v669_v16 = vor.u32 %v668_v3, %v664_v2  ;;  %v755_v32 = vsel %vm707_vm0, %v753_v26, %v754_v27 }
  0x45   : > { %774 = vrot.lane.b32.xlu1 %v737_v21, %s3323_s14  ;;  %v661_v21 = vrot.slane %v659_v14, 1 }
  0x46   : > { %v674_v25 = vsel %vm482_vm1, %v669_v16, %v673_v17 }
  0x47   : > { %v662_v28 = vsel %vm482_vm1, %v657_v19, %v661_v21 }
  0x48   : > { %772 = vrot.lane.b32.xlu0 %v734_v29, %s3323_s14  ;;  %v750_v29 = vrot.slane %v3584_v50, 1 }
  0x49   : > { %697 = vrot.lane.b32.xlu1 %v626_v37, %s3324_s17 }
  0x4a   : > { %v752_v33 = vsel %vm707_vm0, %v750_v29, %v751_v30 }
  0x4c   : > { %695 = vrot.lane.b32.xlu0 %v614_v46, %s3324_s17 }
  0x4d   : > { %778 = vrot.lane.b32.xlu1 %v743_v51, %s3323_s14 }
  0x50   : > { %776 = vrot.lane.b32.xlu0 %v740_v57, %s3323_s14 }
  0x51   : > { %701 = vrot.lane.b32.xlu1 %v650_v1, %s3324_s17 }
  0x54   : > { %699 = vrot.lane.b32.xlu0 %v638_v10, %s3324_s17 }
  0x55   : > { %782 = vrot.lane.b32.xlu1 %v749_v15, %s3323_s14 }
  0x58   : > { %780 = vrot.lane.b32.xlu0 %v746_v18, %s3323_s14 }
  0x59   : > { %705 = vrot.lane.b32.xlu1 %v674_v25, %s3324_s17 }
  0x5c   : > { %703 = vrot.lane.b32.xlu0 %v662_v28, %s3324_s17 }
  0x5d   : > { %786 = vrot.lane.b32.xlu1 %v755_v32, %s3323_s14 }
  0x60   : > { %784 = vrot.lane.b32.xlu0 %v752_v33, %s3323_s14  ;;  %s2809_s14 = sshll.u32 %s3390_s28, 1 }
  0x61   : > { %p299_p11 = scmp.lt.s32.totalorder %s2809_s14, 3 }
  0x63   : > { %s4818_s14 = smov (!%p299_p11, %s2809_s14), 3 }
  0x64   : > { %s2810_s15 = sshll.u32 %s4818_s14, 3  ;;  %s3326_s14 = smov [#allocation2]  }
  0x65   : > { %s302_s19 = scalar_lea.vmem %s4627_s1, %s2810_s15  ;;  %s3263_s15 = sshll.u32 %s3326_s14, 4  ;;  %s3264_s15 = int_to_ptr.vmem [resolvable:$false] %s3263_s15 }
  0x66   : > { %s3265_s16 = scalar_lea.vmem %s3264_s15, 512 }
  0x92   : > { %v757_v34 = vpop.permute.xlu1 %756 }
  0x96   : > { %v676_v35 = vpop.permute.xlu0 %675 }
  0x97   : > { %v759_v37 = vpop.permute.xlu1 %758  ;;  %v790_v38 = vsel %vm788_vm2, %v3436_v4, %v676_v35 }
  0x98   : > { %v823_v39 = vsel %vm821_vm3, %v790_v38, %v757_v34 }
  0x99   : > { %2944 = vmatprep.mubr.msk.bf16.mxu0 %vm909_vm4, %v823_v39 }
  0x9a   : > { %v678_v40 = vpop.permute.xlu0 %677 }
  0x9b   : > { %v792_v42 = vsel %vm788_vm2, %v3440_v6, %v678_v40  ;;  %v682_v43 = vpop.permute.xlu1 %681 }
  0x9c   : > { %v825_v44 = vsel %vm821_vm3, %v792_v42, %v759_v37  ;;  %v796_v48 = vsel %vm788_vm2, %v3455_v22, %v682_v43  ;;  %v3097_v37 = vld [vmem:[%s4630_s4] sm:$0xff]  }
  0x9d   : > { %2945 = vmatmul.mubr.msk.bf16.vlgmr.msra.gmra.mrb[0].mxu0 %vm909_vm4, %v825_v44  ;;  %2976 = vmatprep.subr.bf16.mxu1 %v3097_v37 }
  0x9e   : > { %v680_v46 = vpop.permute.xlu0 %679  ;;  %2977 = vmatpush3.bf16.msra.mxu1 %v3097_v37 }
  0x9f   : > { %v763_v49 = vpop.permute.xlu1 %762  ;;  %v794_v4 = vsel %vm788_vm2, %v3465_v31, %v680_v46 }
  0xa0   : > { %v829_v51 = vsel %vm821_vm3, %v796_v48, %v763_v49 }
  0xa2   : > { %v761_v52 = vpop.permute.xlu0 %760 }
  0xa3   : > { %v827_v53 = vsel %vm821_vm3, %v794_v4, %v761_v52  ;;  %v686_v54 = vpop.permute.xlu1 %685 }
  0xa4   : > { %2948 = vmatprep.mubr.msk.bf16.mxu0 %vm909_vm4, %v827_v53  ;;  %v800_v56 = vsel %vm788_vm2, %v3470_v36, %v686_v54 }
  0xa5   : > { %2949 = vmatmul.mubr.msk.bf16.gmra.mrb[4].mxu0 %vm909_vm4, %v829_v51 }
  0xa6   : > { %v684_v6 = vpop.permute.xlu0 %683 }
  0xa7   : > { %v767_v57 = vpop.permute.xlu1 %766  ;;  %v798_v22 = vsel %vm788_vm2, %v3479_v45, %v684_v6 }
  0xa8   : > { %v833_v31 = vsel %vm821_vm3, %v800_v56, %v767_v57 }
  0xaa   : > { %v765_v58 = vpop.permute.xlu0 %764 }
  0xab   : > { %v831_v59 = vsel %vm821_vm3, %v798_v22, %v765_v58  ;;  %v690_v60 = vpop.permute.xlu1 %689 }
  0xac   : > { %2952 = vmatprep.mubr.msk.bf16.mxu0 %vm909_vm4, %v831_v59  ;;  %v804_v62 = vsel %vm788_vm2, %v3494_v63, %v690_v60 }
  0xad   : > { %2953 = vmatmul.mubr.msk.bf16.gmra.mrb[8].mxu0 %vm909_vm4, %v833_v31 }
  0xae   : > { %v688_v61 = vpop.permute.xlu0 %687 }
  0xaf   : > { %v771_v0 = vpop.permute.xlu1 %770  ;;  %v802_v36 = vsel %vm788_vm2, %v3497_v5, %v688_v61 }
  0xb0   : > { %v837_v45 = vsel %vm821_vm3, %v804_v62, %v771_v0 }
  0xb2   : > { %v769_v1 = vpop.permute.xlu0 %768 }
  0xb3   : > { %v835_v2 = vsel %vm821_vm3, %v802_v36, %v769_v1  ;;  %v694_v3 = vpop.permute.xlu1 %693 }
  0xb4   : > { %2956 = vmatprep.mubr.msk.bf16.mxu0 %vm909_vm4, %v835_v2  ;;  %v808_v8 = vsel %vm788_vm2, %v3515_v24, %v694_v3 }
  0xb5   : > { %2957 = vmatmul.mubr.msk.bf16.gmra.mrb[12].mxu0 %vm909_vm4, %v837_v45 }
  0xb6   : > { %v692_v7 = vpop.permute.xlu0 %691 }
  0xb7   : > { %v775_v9 = vpop.permute.xlu1 %774  ;;  %v806_v63 = vsel %vm788_vm2, %v3512_v23, %v692_v7 }
  0xb8   : > { %v841_v5 = vsel %vm821_vm3, %v808_v8, %v775_v9 }
  0xba   : > { %v773_v10 = vpop.permute.xlu0 %772 }
  0xbb   : > { %v839_v11 = vsel %vm821_vm3, %v806_v63, %v773_v10  ;;  %v698_v13 = vpop.permute.xlu1 %697 }
  0xbc   : > { %2960 = vmatprep.mubr.msk.bf16.mxu0 %vm909_vm4, %v839_v11  ;;  %v812_v15 = vsel %vm788_vm2, %v3532_v47, %v698_v13 }
  0xbd   : > { %2961 = vmatmul.mubr.msk.bf16.gmra.mrb[16].mxu0 %vm909_vm4, %v841_v5 }
  0xbe   : > { %v696_v14 = vpop.permute.xlu0 %695 }
  0xbf   : > { %v779_v16 = vpop.permute.xlu1 %778  ;;  %v810_v24 = vsel %vm788_vm2, %v3540_v55, %v696_v14 }
  0xc0   : > { %v845_v23 = vsel %vm821_vm3, %v812_v15, %v779_v16 }
  0xc2   : > { %v777_v17 = vpop.permute.xlu0 %776 }
  0xc3   : > { %v843_v18 = vsel %vm821_vm3, %v810_v24, %v777_v17  ;;  %v702_v19 = vpop.permute.xlu1 %701 }
  0xc4   : > { %2964 = vmatprep.mubr.msk.bf16.mxu0 %vm909_vm4, %v843_v18  ;;  %v816_v25 = vsel %vm788_vm2, %v3554_v12, %v702_v19 }
  0xc5   : > { %2965 = vmatmul.mubr.msk.bf16.gmra.mrb[20].mxu0 %vm909_vm4, %v845_v23 }
  0xc6   : > { %v700_v21 = vpop.permute.xlu0 %699 }
  0xc7   : > { %v783_v26 = vpop.permute.xlu1 %782  ;;  %v814_v47 = vsel %vm788_vm2, %v3562_v20, %v700_v21 }
  0xc8   : > { %v849_v55 = vsel %vm821_vm3, %v816_v25, %v783_v26 }
  0xca   : > { %v781_v27 = vpop.permute.xlu0 %780 }
  0xcb   : > { %v847_v28 = vsel %vm821_vm3, %v814_v47, %v781_v27  ;;  %v706_v29 = vpop.permute.xlu1 %705 }
  0xcc   : > { %2968 = vmatprep.mubr.msk.bf16.mxu0 %vm909_vm4, %v847_v28  ;;  %v820_v32 = vsel %vm788_vm2, %v3576_v41, %v706_v29  ;;  %v3098_v41 = vld [vmem:[%s4630_s4 + $0x8] sm:$0xff]  }
  0xcd   : > { %2969 = vmatmul.mubr.msk.bf16.gmra.mrb[24].mxu0 %vm909_vm4, %v849_v55  ;;  %2978 = vmatprep.subr.bf16.mxu1 %v3098_v41 }
  0xce   : > { %v704_v30 = vpop.permute.xlu0 %703  ;;  %2979 = vmatpush3.bf16.msra.mxu1 %v3098_v41 }
  0xcf   : > { %v787_v33 = vpop.permute.xlu1 %786  ;;  %v818_v12 = vsel %vm788_vm2, %v3584_v50, %v704_v30  ;;  %v3690_v50 = vld [vmem:[%s4629_s3] ss:$0 sm:$0xff] }
  0xd0   : > { %v853_v20 = vsel %vm821_vm3, %v820_v32, %v787_v33 }
  0xd2   : > { %v785_v34 = vpop.permute.xlu0 %784 }
  0xd3   : > { %v851_v35 = vsel %vm821_vm3, %v818_v12, %v785_v34 }
  0xd4   : > { %2972 = vmatprep.mubr.msk.bf16.mxu0 %vm909_vm4, %v851_v35 }
  0xd5   : > { %2973 = vmatmul.mubr.msk.bf16.gmra.mrb[28].mxu0 %vm909_vm4, %v853_v20 }
 0x170   : > { %v2946_v38 = vpop.f32.mrb[0].mxu0 }
 0x171   : > { %v976_v39 = vpop.f32.mrb[1].mxu0  ;;  %v3696_v43 = vadd.f32 %v2946_v38, %v3690_v50 }
 0x172   : > { %v3693_v40 = vadd.f32 %v3690_v50, %v976_v39  ;;  %v2947_v42 = vpop.f32.mrb[2].mxu0 }
 0x173   : > { %4706 = vst [vmem:[#allocation6_spill] sm:$0xff] %v3696_v43  ;;  %v3699_v44 = vadd.f32 %v2947_v42, %v3690_v50  ;;  %v979_v46 = vpop.f32.mrb[3].mxu0  ;;  %v4662_v52 = vmax.f32 %v3696_v43, 0.0 }
 0x174   : > { %4705 = vst [vmem:[#allocation5_spill] sm:$0xff] %v3693_v40  ;;  %v3702_v48 = vadd.f32 %v3690_v50, %v979_v46  ;;  %v4664_v4 = vmax.f32 %v3693_v40, 0.0 }
 0x175   : > { %4707 = vst [vmem:[#allocation7_spill] sm:$0xff] %v3699_v44  ;;  %v4663_v49 = vmax.f32 %v3699_v44, 0.0 }
 0x176   : > { %4708 = vst [vmem:[#allocation8_spill] sm:$0xff] %v3702_v48  ;;  %v4665_v51 = vmax.f32 %v3702_v48, 0.0 }
 0x177   : > { %v1136_v6 = vpack.c.bf16 %v4663_v49, %v4662_v52 }
 0x178   : > { %v2950_v53 = vpop.f32.mrb[4].mxu0  ;;  %v1135_v54 = vpack.c.bf16 %v4665_v51, %v4664_v4 }
 0x179   : > { %v992_v56 = vpop.f32.mrb[5].mxu0  ;;  %v3721_v31 = vadd.f32 %v2950_v53, %v3690_v50 }
 0x17a   : > { %v3717_v57 = vadd.f32 %v3690_v50, %v992_v56  ;;  %v2951_v22 = vpop.f32.mrb[6].mxu0  ;;  %2980 = vmatprep.mubr.msk.bf16.mxu1 %vm788_vm2, %v1135_v54 }
 0x17b   : > { %4710 = vst [vmem:[#allocation10_spill] sm:$0xff] %v3721_v31  ;;  %v3724_v58 = vadd.f32 %v2951_v22, %v3690_v50  ;;  %v995_v59 = vpop.f32.mrb[7].mxu0  ;;  %2981 = vmatmul.mubr.msk.bf16.vlgmr.msra.gmra.mrb[0].mxu1 %vm788_vm2, %v1136_v6  ;;  %v4658_v36 = vmax.f32 %v3721_v31, 0.0 }
 0x17c   : > { %4709 = vst [vmem:[#allocation9_spill] sm:$0xff] %v3717_v57  ;;  %v3728_v60 = vadd.f32 %v3690_v50, %v995_v59  ;;  %v4660_v62 = vmax.f32 %v3717_v57, 0.0 }
 0x17d   : > { %4711 = vst [vmem:[#allocation11_spill] sm:$0xff] %v3724_v58  ;;  %v4659_v61 = vmax.f32 %v3724_v58, 0.0 }
 0x17e   : > { %4712 = vst [vmem:[#allocation12_spill] sm:$0xff] %v3728_v60  ;;  %v4661_v0 = vmax.f32 %v3728_v60, 0.0 }
 0x17f   : > { %v1138_v2 = vpack.c.bf16 %v4659_v61, %v4658_v36 }
 0x180   : > { %v1137_v45 = vpack.c.bf16 %v4661_v0, %v4660_v62  ;;  %v2954_v1 = vpop.f32.mrb[8].mxu0 }
 0x181   : > { %v1008_v3 = vpop.f32.mrb[9].mxu0  ;;  %v3747_v9 = vadd.f32 %v2954_v1, %v3690_v50 }
 0x182   : > { %v3743_v7 = vadd.f32 %v3690_v50, %v1008_v3  ;;  %v2955_v8 = vpop.f32.mrb[10].mxu0  ;;  %2984 = vmatprep.mubr.msk.bf16.mxu1 %vm788_vm2, %v1137_v45 }
 0x183   : > { %4714 = vst [vmem:[#allocation14_spill] sm:$0xff] %v3747_v9  ;;  %v3750_v63 = vadd.f32 %v2955_v8, %v3690_v50  ;;  %v1011_v10 = vpop.f32.mrb[11].mxu0  ;;  %2985 = vmatmul.mubr.msk.bf16.gmra.mrb[4].mxu1 %vm788_vm2, %v1138_v2  ;;  %v4654_v15 = vmax.f32 %v3747_v9, 0.0 }
 0x184   : > { %4713 = vst [vmem:[#allocation13_spill] sm:$0xff] %v3743_v7  ;;  %v3754_v5 = vadd.f32 %v3690_v50, %v1011_v10  ;;  %v4656_v13 = vmax.f32 %v3743_v7, 0.0 }
 0x185   : > { %4715 = vst [vmem:[#allocation15_spill] sm:$0xff] %v3750_v63  ;;  %v4655_v11 = vmax.f32 %v3750_v63, 0.0 }
 0x186   : > { %4716 = vst [vmem:[#allocation16_spill] sm:$0xff] %v3754_v5  ;;  %v4657_v14 = vmax.f32 %v3754_v5, 0.0 }
 0x187   : > { %v1140_v17 = vpack.c.bf16 %v4655_v11, %v4654_v15 }
 0x188   : > { %v1139_v16 = vpack.c.bf16 %v4657_v14, %v4656_v13  ;;  %v2958_v24 = vpop.f32.mrb[12].mxu0 }
 0x189   : > { %v1024_v23 = vpop.f32.mrb[13].mxu0  ;;  %v3773_v21 = vadd.f32 %v2958_v24, %v3690_v50 }
 0x18a   : > { %v3769_v18 = vadd.f32 %v3690_v50, %v1024_v23  ;;  %v2959_v19 = vpop.f32.mrb[14].mxu0  ;;  %2988 = vmatprep.mubr.msk.bf16.mxu1 %vm788_vm2, %v1139_v16 }
 0x18b   : > { %4718 = vst [vmem:[#allocation18_spill] sm:$0xff] %v3773_v21  ;;  %v3776_v25 = vadd.f32 %v2959_v19, %v3690_v50  ;;  %v1027_v26 = vpop.f32.mrb[15].mxu0  ;;  %2989 = vmatmul.mubr.msk.bf16.gmra.mrb[8].mxu1 %vm788_vm2, %v1140_v17  ;;  %v4650_v29 = vmax.f32 %v3773_v21, 0.0 }
 0x18c   : > { %4717 = vst [vmem:[#allocation17_spill] sm:$0xff] %v3769_v18  ;;  %v3780_v47 = vadd.f32 %v3690_v50, %v1027_v26  ;;  %v4652_v55 = vmax.f32 %v3769_v18, 0.0 }
 0x18d   : > { %4719 = vst [vmem:[#allocation19_spill] sm:$0xff] %v3776_v25  ;;  %v4651_v27 = vmax.f32 %v3776_v25, 0.0 }
 0x18e   : > { %4720 = vst [vmem:[#allocation20_spill] sm:$0xff] %v3780_v47  ;;  %v4653_v28 = vmax.f32 %v3780_v47, 0.0 }
 0x18f   : > { %v1142_v33 = vpack.c.bf16 %v4651_v27, %v4650_v29 }
 0x190   : > { %v1141_v30 = vpack.c.bf16 %v4653_v28, %v4652_v55  ;;  %v2962_v32 = vpop.f32.mrb[16].mxu0 }
 0x191   : > { %v3795_v12 = vadd.f32 %v2962_v32, %v3690_v50  ;;  %v1040_v34 = vpop.f32.mrb[17].mxu0 }
 0x192   : > { %v3798_v20 = vadd.f32 %v3690_v50, %v1040_v34  ;;  %2992 = vmatprep.mubr.msk.bf16.mxu1 %vm788_vm2, %v1141_v30  ;;  %v2963_v35 = vpop.f32.mrb[18].mxu0 }
 0x193   : > { %4721 = vst [vmem:[#allocation21_spill] sm:$0xff] %v3795_v12  ;;  %v4648_v37 = vmax.f32 %v3795_v12, 0.0  ;;  %v3803_v41 = vadd.f32 %v2963_v35, %v3690_v50  ;;  %2993 = vmatmul.mubr.msk.bf16.gmra.mrb[12].mxu1 %vm788_vm2, %v1142_v33  ;;  %v1043_v38 = vpop.f32.mrb[19].mxu0 }
 0x194   : > { %4722 = vst [vmem:[#allocation22_spill] sm:$0xff] %v3798_v20  ;;  %v4646_v39 = vmax.f32 %v3798_v20, 0.0  ;;  %v3808_v42 = vadd.f32 %v3690_v50, %v1043_v38 }
 0x195   : > { %4723 = vst [vmem:[#allocation23_spill] sm:$0xff] %v3803_v41  ;;  %v4649_v46 = vmax.f32 %v3803_v41, 0.0 }
 0x196   : > { %4724 = vst [vmem:[#allocation24_spill] sm:$0xff] %v3808_v42  ;;  %v4647_v53 = vmax.f32 %v3808_v42, 0.0 }
 0x197   : > { %v1144_v54 = vpack.c.bf16 %v4649_v46, %v4648_v37 }
 0x198   : > { %v1143_v6 = vpack.c.bf16 %v4647_v53, %v4646_v39  ;;  %v2966_v56 = vpop.f32.mrb[20].mxu0 }
 0x199   : > { %v3821_v22 = vadd.f32 %v2966_v56, %v3690_v50  ;;  %v1056_v59 = vpop.f32.mrb[21].mxu0 }
 0x19a   : > { %v3824_v45 = vadd.f32 %v3690_v50, %v1056_v59  ;;  %v2967_v1 = vpop.f32.mrb[22].mxu0  ;;  %2996 = vmatprep.mubr.msk.bf16.mxu1 %vm788_vm2, %v1143_v6 }
 0x19b   : > { %4725 = vst [vmem:[#allocation25_spill] sm:$0xff] %v3821_v22  ;;  %v4634_v2 = vmax.f32 %v3821_v22, 0.0  ;;  %v3829_v3 = vadd.f32 %v2967_v1, %v3690_v50  ;;  %v1059_v8 = vpop.f32.mrb[23].mxu0  ;;  %2997 = vmatmul.mubr.msk.bf16.gmra.mrb[16].mxu1 %vm788_vm2, %v1144_v54 }
 0x19c   : > { %4726 = vst [vmem:[#allocation26_spill] sm:$0xff] %v3824_v45  ;;  %v4642_v10 = vmax.f32 %v3824_v45, 0.0  ;;  %v3834_v16 = vadd.f32 %v3690_v50, %v1059_v8 }
 0x19d   : > { %4727 = vst [vmem:[#allocation27_spill] sm:$0xff] %v3829_v3  ;;  %v4639_v24 = vmax.f32 %v3829_v3, 0.0 }
 0x19e   : > { %4728 = vst [vmem:[#allocation28_spill] sm:$0xff] %v3834_v16  ;;  %v4645_v17 = vmax.f32 %v3834_v16, 0.0 }
 0x19f   : > { %v1146_v23 = vpack.c.bf16 %v4639_v24, %v4634_v2 }
 0x1a0   : > { %v1145_v19 = vpack.c.bf16 %v4645_v17, %v4642_v10  ;;  %v2970_v26 = vpop.f32.mrb[24].mxu0 }
 0x1a1   : > { %v3847_v30 = vadd.f32 %v2970_v26, %v3690_v50  ;;  %v1072_v32 = vpop.f32.mrb[25].mxu0 }
 0x1a2   : > { %v3850_v33 = vadd.f32 %v3690_v50, %v1072_v32  ;;  %v2971_v34 = vpop.f32.mrb[26].mxu0  ;;  %3000 = vmatprep.mubr.msk.bf16.mxu1 %vm788_vm2, %v1145_v19 }
 0x1a3   : > { %4729 = vst [vmem:[#allocation29_spill] sm:$0xff] %v3847_v30  ;;  %v4635_v35 = vmax.f32 %v3847_v30, 0.0  ;;  %v3855_v38 = vadd.f32 %v2971_v34, %v3690_v50  ;;  %v1075_v54 = vpop.f32.mrb[27].mxu0  ;;  %3001 = vmatmul.mubr.msk.bf16.gmra.mrb[20].mxu1 %vm788_vm2, %v1146_v23 }
 0x1a4   : > { %4730 = vst [vmem:[#allocation30_spill] sm:$0xff] %v3850_v33  ;;  %v4637_v6 = vmax.f32 %v3850_v33, 0.0  ;;  %v3860_v56 = vadd.f32 %v3690_v50, %v1075_v54 }
 0x1a5   : > { %4731 = vst [vmem:[#allocation31_spill] sm:$0xff] %v3855_v38  ;;  %v4636_v59 = vmax.f32 %v3855_v38, 0.0 }
 0x1a6   : > { %4732 = vst [vmem:[#allocation32_spill] sm:$0xff] %v3860_v56  ;;  %v4638_v1 = vmax.f32 %v3860_v56, 0.0 }
 0x1a7   : > { %v1148_v8 = vpack.c.bf16 %v4636_v59, %v4635_v35 }
 0x1a8   : > { %v1147_v19 = vpack.c.bf16 %v4638_v1, %v4637_v6  ;;  %v2974_v23 = vpop.f32.mrb[28].mxu0 }
 0x1a9   : > { %v3873_v26 = vadd.f32 %v2974_v23, %v3690_v50  ;;  %v1088_v32 = vpop.f32.mrb[29].mxu0 }
 0x1aa   : > { %v3876_v34 = vadd.f32 %v3690_v50, %v1088_v32  ;;  %v2975_v54 = vpop.f32.mrb[30].mxu0  ;;  %3004 = vmatprep.mubr.msk.bf16.mxu1 %vm788_vm2, %v1147_v19 }
 0x1ab   : > { %4733 = vst [vmem:[#allocation33_spill] sm:$0xff] %v3873_v26  ;;  %v4640_v2 = vmax.f32 %v3873_v26, 0.0  ;;  %v3881_v35 = vadd.f32 %v2975_v54, %v3690_v50  ;;  %v1091_v59 = vpop.f32.mrb[31].mxu0  ;;  %3005 = vmatmul.mubr.msk.bf16.gmra.mrb[24].mxu1 %vm788_vm2, %v1148_v8 }
 0x1ac   : > { %4734 = vst [vmem:[#allocation34_spill] sm:$0xff] %v3876_v34  ;;  %v4643_v6 = vmax.f32 %v3876_v34, 0.0  ;;  %v3886_v23 = vadd.f32 %v3690_v50, %v1091_v59  ;;  %v3903_v50 = vld [vmem:[%s4631_s5] ss:$0 sm:$0xff] }
 0x1ad   : > { %4735 = vst [vmem:[#allocation35_spill] sm:$0xff] %v3881_v35  ;;  %v4641_v1 = vmax.f32 %v3881_v35, 0.0 }
 0x1ae   : > { %4736 = vst [vmem:[#allocation36_spill] sm:$0xff] %v3886_v23  ;;  %v4644_v32 = vmax.f32 %v3886_v23, 0.0 }
 0x1af   : > { %v1150_v19 = vpack.c.bf16 %v4641_v1, %v4640_v2 }
 0x1b0   : > { %v1149_v54 = vpack.c.bf16 %v4644_v32, %v4643_v6 }
 0x1b2   : > { %3008 = vmatprep.mubr.msk.bf16.mxu1 %vm788_vm2, %v1149_v54 }
 0x1b3   : > { %3009 = vmatmul.mubr.msk.bf16.gmra.mrb[28].mxu1 %vm788_vm2, %v1150_v19 }
 0x24e   : > { %v2982_v59 = vpop.f32.mrb[0].mxu1 }
 0x24f   : > { %v1265_v8 = vadd.f32 %v2982_v59, %v3903_v50  ;;  %v1256_v24 = vpop.f32.mrb[1].mxu1 }
 0x250   : > { %v1257_v2 = vadd.f32 %v3903_v50, %v1256_v24  ;;  %v2983_v1 = vpop.f32.mrb[2].mxu1 }
 0x251   : > { %3099 = vtanh.f32 %v1265_v8  ;;  %v1259_v10 = vpop.f32.mrb[3].mxu1  ;;  %v1268_v54 = vadd.f32 %v2983_v1, %v3903_v50 }
 0x252   : > { %v1260_v6 = vadd.f32 %v3903_v50, %v1259_v10  ;;  %3101 = vtanh.f32 %v1257_v2  ;;  %v3915_v10 = vld [vmem:[%s4632_s6] ss:$0 sm:$0xff] }
 0x254   : > { %3103 = vtanh.f32 %v1260_v6 }
 0x255   : > { %3105 = vtanh.f32 %v1268_v54 }
 0x256   : > { %v2986_v19 = vpop.f32.mrb[4].mxu1 }
 0x257   : > { %v1281_v32 = vadd.f32 %v2986_v19, %v3903_v50  ;;  %v1272_v17 = vpop.f32.mrb[5].mxu1 }
 0x258   : > { %v1273_v39 = vadd.f32 %v3903_v50, %v1272_v17  ;;  %v2987_v59 = vpop.f32.mrb[6].mxu1 }
 0x259   : > { %3107 = vtanh.f32 %v1281_v32  ;;  %v1284_v24 = vadd.f32 %v2987_v59, %v3903_v50  ;;  %v1275_v53 = vpop.f32.mrb[7].mxu1 }
 0x25a   : > { %3109 = vtanh.f32 %v1273_v39  ;;  %v1276_v6 = vadd.f32 %v3903_v50, %v1275_v53 }
 0x25b   : > { %v3100_v2 = vpop.eup %3099  ;;  %3111 = vtanh.f32 %v1284_v24 }
 0x25c   : > { %v1424_v1 = vmul.f32 %v3100_v2, %v3915_v10  ;;  %v3102_v8 = vpop.eup %3101  ;;  %3113 = vtanh.f32 %v1276_v6 }
 0x25d   : > { %v1422_v39 = vmul.f32 %v3102_v8, %v3915_v10 }
 0x25e   : > { %v3104_v54 = vpop.eup %3103  ;;  %1458 = vadd.xlane.f32.xlu0 %v1424_v1  ;;  %v2990_v17 = vpop.f32.mrb[8].mxu1 }
 0x25f   : > { %v1297_v32 = vadd.f32 %v2990_v17, %v3903_v50  ;;  %v1288_v19 = vpop.f32.mrb[9].mxu1  ;;  %v1423_v59 = vmul.f32 %v3104_v54, %v3915_v10  ;;  %v3106_v24 = vpop.eup %3105 }
 0x260   : > { %v1289_v37 = vadd.f32 %v3903_v50, %v1288_v19  ;;  %v2991_v46 = vpop.f32.mrb[10].mxu1  ;;  %v1425_v54 = vmul.f32 %v3106_v24, %v3915_v10 }
 0x261   : > { %3115 = vtanh.f32 %v1297_v32  ;;  %v1300_v53 = vadd.f32 %v2991_v46, %v3903_v50  ;;  %1456 = vadd.xlane.f32.xlu1 %v1423_v59  ;;  %v1291_v2 = vpop.f32.mrb[11].mxu1 }
 0x262   : > { %3117 = vtanh.f32 %v1289_v37  ;;  %1454 = vadd.xlane.f32.xlu0 %v1422_v39  ;;  %v1292_v6 = vadd.f32 %v3903_v50, %v1291_v2 }
 0x263   : > { %v3108_v1 = vpop.eup %3107  ;;  %3119 = vtanh.f32 %v1300_v53 }
 0x264   : > { %v3110_v17 = vpop.eup %3109  ;;  %v1428_v19 = vmul.f32 %v3108_v1, %v3915_v10  ;;  %3121 = vtanh.f32 %v1292_v6 }
 0x265   : > { %v3112_v29 = vpop.eup %3111  ;;  %v1426_v53 = vmul.f32 %v3110_v17, %v3915_v10 }
 0x266   : > { %1460 = vadd.xlane.f32.xlu0 %v1425_v54  ;;  %1466 = vadd.xlane.f32.xlu1 %v1428_v19  ;;  %v2994_v8 = vpop.f32.mrb[12].mxu1  ;;  %v1429_v39 = vmul.f32 %v3112_v29, %v3915_v10  ;;  %v3114_v2 = vpop.eup %3113 }
 0x267   : > { %v1313_v46 = vadd.f32 %v2994_v8, %v3903_v50  ;;  %v1304_v32 = vpop.f32.mrb[13].mxu1  ;;  %v1427_v8 = vmul.f32 %v3114_v2, %v3915_v10 }
 0x268   : > { %v1305_v37 = vadd.f32 %v3903_v50, %v1304_v32  ;;  %v2995_v59 = vpop.f32.mrb[14].mxu1 }
 0x269   : > { %3123 = vtanh.f32 %v1313_v46  ;;  %v1316_v24 = vadd.f32 %v2995_v59, %v3903_v50  ;;  %v1307_v1 = vpop.f32.mrb[15].mxu1 }
 0x26a   : > { %3125 = vtanh.f32 %v1305_v37  ;;  %1468 = vadd.xlane.f32.xlu0 %v1429_v39  ;;  %1462 = vadd.xlane.f32.xlu1 %v1426_v53  ;;  %v1308_v6 = vadd.f32 %v3903_v50, %v1307_v1 }
 0x26b   : > { %v3116_v54 = vpop.eup %3115  ;;  %3127 = vtanh.f32 %v1316_v24 }
 0x26c   : > { %v3118_v19 = vpop.eup %3117  ;;  %v1432_v32 = vmul.f32 %v3116_v54, %v3915_v10  ;;  %3129 = vtanh.f32 %v1308_v6 }
 0x26d   : > { %v3120_v29 = vpop.eup %3119  ;;  %v1430_v53 = vmul.f32 %v3118_v19, %v3915_v10 }
 0x26e   : > { %1464 = vadd.xlane.f32.xlu0 %v1427_v8  ;;  %1474 = vadd.xlane.f32.xlu1 %v1432_v32  ;;  %v2998_v17 = vpop.f32.mrb[16].mxu1  ;;  %v1433_v39 = vmul.f32 %v3120_v29, %v3915_v10  ;;  %v3122_v1 = vpop.eup %3121 }
 0x26f   : > { %v1329_v46 = vadd.f32 %v2998_v17, %v3903_v50  ;;  %v1320_v59 = vpop.f32.mrb[17].mxu1  ;;  %v1431_v17 = vmul.f32 %v3122_v1, %v3915_v10 }
 0x270   : > { %v1321_v37 = vadd.f32 %v3903_v50, %v1320_v59  ;;  %v2999_v24 = vpop.f32.mrb[18].mxu1 }
 0x271   : > { %3131 = vtanh.f32 %v1329_v46  ;;  %v1332_v2 = vadd.f32 %v2999_v24, %v3903_v50  ;;  %v1323_v54 = vpop.f32.mrb[19].mxu1 }
 0x272   : > { %3133 = vtanh.f32 %v1321_v37  ;;  %1476 = vadd.xlane.f32.xlu0 %v1433_v39  ;;  %1470 = vadd.xlane.f32.xlu1 %v1430_v53  ;;  %v1324_v6 = vadd.f32 %v3903_v50, %v1323_v54 }
 0x273   : > { %v3124_v8 = vpop.eup %3123  ;;  %3135 = vtanh.f32 %v1332_v2 }
 0x274   : > { %v3126_v32 = vpop.eup %3125  ;;  %v1436_v29 = vmul.f32 %v3124_v8, %v3915_v10  ;;  %3137 = vtanh.f32 %v1324_v6 }
 0x275   : > { %v3128_v59 = vpop.eup %3127  ;;  %v1434_v53 = vmul.f32 %v3126_v32, %v3915_v10 }
 0x276   : > { %1472 = vadd.xlane.f32.xlu0 %v1431_v17  ;;  %1482 = vadd.xlane.f32.xlu1 %v1436_v29  ;;  %v3002_v19 = vpop.f32.mrb[20].mxu1  ;;  %v1437_v39 = vmul.f32 %v3128_v59, %v3915_v10  ;;  %v3130_v54 = vpop.eup %3129 }
 0x277   : > { %v1345_v46 = vadd.f32 %v3002_v19, %v3903_v50  ;;  %v1336_v24 = vpop.f32.mrb[21].mxu1  ;;  %v1435_v19 = vmul.f32 %v3130_v54, %v3915_v10 }
 0x278   : > { %v1337_v37 = vadd.f32 %v3903_v50, %v1336_v24  ;;  %v3003_v2 = vpop.f32.mrb[22].mxu1 }
 0x279   : > { %3139 = vtanh.f32 %v1345_v46  ;;  %v1348_v1 = vadd.f32 %v3003_v2, %v3903_v50  ;;  %v1339_v8 = vpop.f32.mrb[23].mxu1 }
 0x27a   : > { %3141 = vtanh.f32 %v1337_v37  ;;  %1484 = vadd.xlane.f32.xlu0 %v1437_v39  ;;  %1478 = vadd.xlane.f32.xlu1 %v1434_v53  ;;  %v1340_v6 = vadd.f32 %v3903_v50, %v1339_v8 }
 0x27b   : > { %v3132_v17 = vpop.eup %3131  ;;  %3143 = vtanh.f32 %v1348_v1 }
 0x27c   : > { %v3134_v29 = vpop.eup %3133  ;;  %v1440_v59 = vmul.f32 %v3132_v17, %v3915_v10  ;;  %3145 = vtanh.f32 %v1340_v6 }
 0x27d   : > { %v3136_v24 = vpop.eup %3135  ;;  %v1438_v37 = vmul.f32 %v3134_v29, %v3915_v10 }
 0x27e   : > { %1480 = vadd.xlane.f32.xlu0 %v1435_v19  ;;  %v3006_v32 = vpop.f32.mrb[24].mxu1  ;;  %1490 = vadd.xlane.f32.xlu1 %v1440_v59  ;;  %v1441_v46 = vmul.f32 %v3136_v24, %v3915_v10  ;;  %v3138_v39 = vpop.eup %3137 }
 0x27f   : > { %v1361_v53 = vadd.f32 %v3006_v32, %v3903_v50  ;;  %v1352_v2 = vpop.f32.mrb[25].mxu1  ;;  %v1439_v6 = vmul.f32 %v3138_v39, %v3915_v10 }
 0x280   : > { %v1353_v1 = vadd.f32 %v3903_v50, %v1352_v2  ;;  %v3007_v8 = vpop.f32.mrb[26].mxu1 }
 0x281   : > { %3147 = vtanh.f32 %v1361_v53  ;;  %v1364_v54 = vadd.f32 %v3007_v8, %v3903_v50  ;;  %v1355_v17 = vpop.f32.mrb[27].mxu1 }
 0x282   : > { %3149 = vtanh.f32 %v1353_v1  ;;  %1492 = vadd.xlane.f32.xlu0 %v1441_v46  ;;  %1486 = vadd.xlane.f32.xlu1 %v1438_v37  ;;  %v1356_v19 = vadd.f32 %v3903_v50, %v1355_v17 }
 0x283   : > { %v3140_v59 = vpop.eup %3139  ;;  %3151 = vtanh.f32 %v1364_v54 }
 0x284   : > { %v3142_v29 = vpop.eup %3141  ;;  %v1444_v24 = vmul.f32 %v3140_v59, %v3915_v10  ;;  %3153 = vtanh.f32 %v1356_v19 }
 0x285   : > { %v3144_v32 = vpop.eup %3143  ;;  %v1442_v1 = vmul.f32 %v3142_v29, %v3915_v10 }
 0x286   : > { %1488 = vadd.xlane.f32.xlu0 %v1439_v6  ;;  %v3010_v2 = vpop.f32.mrb[28].mxu1  ;;  %1498 = vadd.xlane.f32.xlu1 %v1444_v24  ;;  %v1445_v53 = vmul.f32 %v3144_v32, %v3915_v10  ;;  %v3146_v46 = vpop.eup %3145 }
 0x287   : > { %v1377_v39 = vadd.f32 %v3010_v2, %v3903_v50  ;;  %v1368_v37 = vpop.f32.mrb[29].mxu1  ;;  %v1443_v19 = vmul.f32 %v3146_v46, %v3915_v10 }
 0x288   : > { %v1369_v8 = vadd.f32 %v3903_v50, %v1368_v37  ;;  %v3011_v17 = vpop.f32.mrb[30].mxu1 }
 0x289   : > { %3155 = vtanh.f32 %v1377_v39  ;;  %v1380_v54 = vadd.f32 %v3011_v17, %v3903_v50  ;;  %v1371_v59 = vpop.f32.mrb[31].mxu1 }
 0x28a   : > { %3157 = vtanh.f32 %v1369_v8  ;;  %1500 = vadd.xlane.f32.xlu0 %v1445_v53  ;;  %v1372_v6 = vadd.f32 %v3903_v50, %v1371_v59  ;;  %1494 = vadd.xlane.f32.xlu1 %v1442_v1 }
 0x28b   : > { %v3148_v24 = vpop.eup %3147  ;;  %3159 = vtanh.f32 %v1380_v54 }
 0x28c   : > { %v3150_v29 = vpop.eup %3149  ;;  %3161 = vtanh.f32 %v1372_v6  ;;  %v1448_v32 = vmul.f32 %v3148_v24, %v3915_v10 }
 0x28d   : > { %v3152_v2 = vpop.eup %3151  ;;  %v1446_v37 = vmul.f32 %v3150_v29, %v3915_v10 }
 0x28e   : > { %1496 = vadd.xlane.f32.xlu0 %v1443_v19  ;;  %1506 = vadd.xlane.f32.xlu1 %v1448_v32  ;;  %v1449_v39 = vmul.f32 %v3152_v2, %v3915_v10  ;;  %v3154_v8 = vpop.eup %3153  ;;  %v1550_v2 = vlaneseq }
 0x28f   : > { %v1447_v50 = vmul.f32 %v3154_v8, %v3915_v10 }
 0x290   : > { %v1551_v8 = vand.u32 127, %v1550_v2 }
 0x292   : > { %1508 = vadd.xlane.f32.xlu0 %v1449_v39  ;;  %1502 = vadd.xlane.f32.xlu1 %v1446_v37 }
 0x293   : > { %v3156_v53 = vpop.eup %3155 }
 0x294   : > { %v3158_v1 = vpop.eup %3157  ;;  %v1452_v19 = vmul.f32 %v3156_v53, %v3915_v10  ;;  %v1556_v53 = vadd.s32 4294967288, %v1551_v8 }
 0x295   : > { %v3160_v46 = vpop.eup %3159  ;;  %v1450_v17 = vmul.f32 %v3158_v1, %v3915_v10 }
 0x296   : > { %v3162_v54 = vpop.eup %3161  ;;  %1504 = vadd.xlane.f32.xlu0 %v1447_v50  ;;  %v1453_v59 = vmul.f32 %v3160_v46, %v3915_v10 }
 0x297   : > { %v1451_v6 = vmul.f32 %v3162_v54, %v3915_v10  ;;  %1510 = vadd.xlane.f32.xlu1 %v1450_v17  ;;  %v3988_v10 = vshrl.u32 %v1550_v2, 7 }
 0x299   : > { %v3995_v54 = vsub.s32 %v1551_v8, %v3988_v10  ;;  %v4176_v47 = vsub.s32 3, %v3988_v10 }
 0x29a   : > { %1512 = vadd.xlane.f32.xlu0 %v1451_v6 }
 0x29b   : > { %1514 = vadd.xlane.f32.xlu1 %v1452_v19 }
 0x29e   : > { %1516 = vadd.xlane.f32.xlu0 %v1453_v59  ;;  %v3998_v59 = vsub.s32 %v1556_v53, %v3988_v10 }
 0x2eb   : > { %v3974_v24 = vpop.xlane.xlu0 %1458 }
 0x2ec   : > { %v1566_v55 = vrot.slane %v3974_v24, %v3995_v54 }
 0x2ee   : > { %v3976_v29 = vpop.xlane.xlu1 %1456 }
 0x2ef   : > { %v3978_v32 = vpop.xlane.xlu0 %1454  ;;  %v1560_v8 = vrot.slane %v3976_v29, %v3998_v59 }
 0x2f0   : > { %v1555_v53 = vrot.slane %v3978_v32, %v3995_v54 }
 0x2f2   : > { %v1562_v61 = vsel %vm1561_vm5, %v1560_v8, %v1555_v53 }
 0x2f3   : > { %v3980_v39 = vpop.xlane.xlu1 %1466  ;;  %v3982_v37 = vpop.xlane.xlu0 %1460 }
 0x2f4   : > { %v1570_v6 = vrot.slane %v3982_v37, %v3998_v59 }
 0x2f6   : > { %v1571_v15 = vsel %vm1561_vm5, %v1570_v6, %v1566_v55  ;;  %v1584_v6 = vrot.slane %v3980_v39, %v3995_v54 }
 0x2f7   : > { %v3984_v50 = vpop.xlane.xlu1 %1462  ;;  %v3986_v1 = vpop.xlane.xlu0 %1468  ;;  %v1699_v0 = vsel %vm1698_vm6, %v1571_v15, %v1562_v61 }
 0x2f8   : > { %v1575_v28 = vrot.slane %v3984_v50, %v3995_v54  ;;  %v1588_v62 = vrot.slane %v3986_v1, %v3998_v59 }
 0x2fa   : > { %v1589_v8 = vsel %vm1561_vm5, %v1588_v62, %v1584_v6 }
 0x2fb   : > { %v3990_v46 = vpop.xlane.xlu1 %1474  ;;  %v3992_v17 = vpop.xlane.xlu0 %1464 }
 0x2fc   : > { %v1579_v2 = vrot.slane %v3992_v17, %v3998_v59  ;;  %v1602_v53 = vrot.slane %v3990_v46, %v3995_v54 }
 0x2fe   : > { %v1580_v14 = vsel %vm1561_vm5, %v1579_v2, %v1575_v28 }
 0x2ff   : > { %v4002_v19 = vpop.xlane.xlu1 %1470  ;;  %v4004_v27 = vpop.xlane.xlu0 %1476  ;;  %v1701_v52 = vsel %vm1700_vm7, %v1580_v14, %v1699_v0 }
 0x300   : > { %v1593_v55 = vrot.slane %v4002_v19, %v3995_v54  ;;  %v1606_v61 = vrot.slane %v4004_v27, %v3998_v59  ;;  %v1703_v15 = vsel %vm1702_vm8, %v1589_v8, %v1701_v52 }
 0x302   : > { %v1607_v52 = vsel %vm1561_vm5, %v1606_v61, %v1602_v53 }
 0x303   : > { %v4017_v11 = vpop.xlane.xlu1 %1482  ;;  %v4019_v13 = vpop.xlane.xlu0 %1472 }
 0x304   : > { %v1597_v36 = vrot.slane %v4019_v13, %v3998_v59  ;;  %v1620_v6 = vrot.slane %v4017_v11, %v3995_v54 }
 0x306   : > { %v1598_v2 = vsel %vm1561_vm5, %v1597_v36, %v1593_v55 }
 0x307   : > { %v4033_v49 = vpop.xlane.xlu1 %1478  ;;  %v4035_v28 = vpop.xlane.xlu0 %1484  ;;  %v1705_v36 = vsel %vm1704_vm9, %v1598_v2, %v1703_v15 }
 0x308   : > { %v1624_v0 = vrot.slane %v4035_v28, %v3998_v59  ;;  %v1611_v62 = vrot.slane %v4033_v49, %v3995_v54  ;;  %v1707_v51 = vsel %vm1706_vm10, %v1607_v52, %v1705_v36 }
 0x30a   : > { %v1625_v15 = vsel %vm1561_vm5, %v1624_v0, %v1620_v6 }
 0x30b   : > { %v4046_v14 = vpop.xlane.xlu0 %1480  ;;  %v4048_v4 = vpop.xlane.xlu1 %1490 }
 0x30c   : > { %v1615_v55 = vrot.slane %v4046_v14, %v3998_v59 }
 0x30e   : > { %v1616_v8 = vsel %vm1561_vm5, %v1615_v55, %v1611_v62 }
 0x30f   : > { %v4060_v2 = vpop.xlane.xlu0 %1492  ;;  %v1709_v26 = vsel %vm1708_vm11, %v1616_v8, %v1707_v51  ;;  %v4064_v35 = vpop.xlane.xlu1 %1486  ;;  %v1638_v51 = vrot.slane %v4048_v4, %v3995_v54 }
 0x310   : > { %v1711_v34 = vsel %vm1710_vm12, %v1625_v15, %v1709_v26  ;;  %v1642_v26 = vrot.slane %v4060_v2, %v3998_v59 }
 0x311   : > { %v1722_v61 = vsel %vm1721_vm13, %v1711_v34, -inf  ;;  %v1629_v34 = vrot.slane %v4064_v35, %v3995_v54 }
 0x312   : > { %1723 = vmax.xlane.f32.xlu1 %v1722_v61  ;;  %v1643_v30 = vsel %vm1561_vm5, %v1642_v26, %v1638_v51 }
 0x313   : > { %v4068_v53 = vpop.xlane.xlu0 %1488  ;;  %v4070_v23 = vpop.xlane.xlu1 %1498 }
 0x314   : > { %v1633_v52 = vrot.slane %v4068_v53, %v3998_v59  ;;  %v1656_v33 = vrot.slane %v4070_v23, %v3995_v54 }
 0x316   : > { %v1634_v38 = vsel %vm1561_vm5, %v1633_v52, %v1629_v34 }
 0x317   : > { %v4072_v62 = vpop.xlane.xlu0 %1500  ;;  %v4074_v36 = vpop.xlane.xlu1 %1494  ;;  %v1712_v51 = vsel %vm1698_vm6, %v1643_v30, %v1634_v38 }
 0x318   : > { %v1647_v6 = vrot.slane %v4074_v36, %v3995_v54  ;;  %v1660_v56 = vrot.slane %v4072_v62, %v3998_v59 }
 0x31a   : > { %v1661_v26 = vsel %vm1561_vm5, %v1660_v56, %v1656_v33 }
 0x31b   : > { %v4076_v55 = vpop.xlane.xlu0 %1496  ;;  %v4078_v0 = vpop.xlane.xlu1 %1506 }
 0x31c   : > { %v1651_v8 = vrot.slane %v4076_v55, %v3998_v59  ;;  %v1674_v52 = vrot.slane %v4078_v0, %v3995_v54 }
 0x31e   : > { %v1652_v22 = vsel %vm1561_vm5, %v1651_v8, %v1647_v6 }
 0x31f   : > { %v4092_v15 = vpop.xlane.xlu0 %1508  ;;  %v4094_v61 = vpop.xlane.xlu1 %1502  ;;  %v1713_v34 = vsel %vm1700_vm7, %v1652_v22, %v1712_v51 }
 0x320   : > { %v1665_v3 = vrot.slane %v4094_v61, %v3995_v54  ;;  %v1678_v6 = vrot.slane %v4092_v15, %v3998_v59  ;;  %v1714_v22 = vsel %vm1702_vm8, %v1661_v26, %v1713_v34 }
 0x322   : > { %v1679_v33 = vsel %vm1561_vm5, %v1678_v6, %v1674_v52  ;;  %v3325_v6 = vmov 0  }
 0x323   : > { %v4105_v45 = vpop.xlane.xlu0 %1504  ;;  %3058 = vset.pattern.permute.xlu0 %v3325_v6  ;;  %3057 = vset.pattern.permute.xlu1 %v3325_v6 }
 0x324   : > { %v1669_v16 = vrot.slane %v4105_v45, %v3998_v59  ;;  %v4109_v20 = vpop.xlane.xlu1 %1510 }
 0x325   : > { %v1683_v42 = vrot.slane %v4109_v20, %v3995_v54 }
 0x326   : > { %v1670_v8 = vsel %vm1561_vm5, %v1669_v16, %v1665_v3 }
 0x327   : > { %v4121_v12 = vpop.xlane.xlu0 %1512  ;;  %v1715_v51 = vsel %vm1704_vm9, %v1670_v8, %v1714_v22  ;;  %v4143_v8 = vsub.s32 0, %v3988_v10 }
 0x328   : > { %v1687_v30 = vrot.slane %v4121_v12, %v3998_v59  ;;  %v4125_v38 = vpop.xlane.xlu1 %1514  ;;  %v1716_v21 = vsel %vm1706_vm10, %v1679_v33, %v1715_v51 }
 0x329   : > { %v1692_v56 = vrot.slane %v4125_v38, %v3995_v54 }
 0x32a   : > { %v1688_v16 = vsel %vm1561_vm5, %v1687_v30, %v1683_v42  ;;  %v4146_v42 = vsub.s32 1, %v3988_v10 }
 0x32b   : > { %v4132_v3 = vpop.xlane.xlu0 %1516  ;;  %v1717_v26 = vsel %vm1708_vm11, %v1688_v16, %v1716_v21  ;;  %v4151_v21 = vsub.s32 5, %v3988_v10  ;;  %v4160_v16 = vsub.s32 6, %v3988_v10 }
 0x32c   : > { %v1696_v41 = vrot.slane %v4132_v3, %v3998_v59 }
 0x32e   : > { %v1697_v25 = vsel %vm1561_vm5, %v1696_v41, %v1692_v56  ;;  %v4156_v56 = vsub.s32 2, %v3988_v10 }
 0x32f   : > { %v1718_v34 = vsel %vm1710_vm12, %v1697_v25, %v1717_v26 }
 0x330   : > { %v1725_v52 = vsel %vm1721_vm13, %v1718_v34, -inf }
 0x331   : > { %1726 = vmax.xlane.f32.xlu0 %v1725_v52 }
 0x39f   : > { %v1724_v30 = vpop.xlane.xlu1 %1723 }
 0x3a0   : > { %v1733_v22 = vrot.slane %v1724_v30, %v4143_v8  ;;  %v1737_v41 = vrot.slane %v1724_v30, %v4146_v42  ;;  %v4163_v26 = vrot.slane %v1724_v30, %v4151_v21  ;;  %v1741_v6 = vrot.slane %v1724_v30, %v4156_v56 }
 0x3a2   : > { %v1810_v25 = vsub.f32 %v3978_v32, %v1733_v22  ;;  %v1811_v33 = vsub.f32 %v3976_v29, %v1733_v22  ;;  %v1812_v51 = vsub.f32 %v3974_v24, %v1737_v41  ;;  %v1813_v18 = vsub.f32 %v3982_v37, %v1737_v41 }
 0x3a3   : > { %v4168_v29 = vsub.s32 7, %v3988_v10  ;;  %v4171_v24 = vrot.slane %v1724_v30, %v4160_v16  ;;  %v1820_v22 = vsub.f32 %v3990_v46, %v4163_v26 }
 0x3a4   : > { %v1842_v34 = vmul.f32 1.442695, %v1810_v25  ;;  %v1844_v52 = vmul.f32 1.442695, %v1811_v33  ;;  %v1846_v32 = vmul.f32 1.442695, %v1812_v51  ;;  %v1814_v25 = vsub.f32 %v3984_v50, %v1741_v6 }
 0x3a5   : > { %v1848_v33 = vmul.f32 1.442695, %v1813_v18  ;;  %v4180_v37 = vrot.slane %v1724_v30, %v4168_v29  ;;  %v1822_v41 = vsub.f32 %v4033_v49, %v4171_v24  ;;  %v1862_v51 = vmul.f32 1.442695, %v1820_v22 }
 0x3a6   : > { %3163 = vpow2.f32 %v1842_v34  ;;  %v1745_v34 = vrot.slane %v1724_v30, %v4176_v47  ;;  %v1850_v46 = vmul.f32 1.442695, %v1814_v25  ;;  %v4194_v49 = vsub.s32 4, %v3988_v10 }
 0x3a7   : > { %3165 = vpow2.f32 %v1844_v52  ;;  %v1815_v52 = vsub.f32 %v3992_v17, %v1741_v6  ;;  %v1824_v50 = vsub.f32 %v4017_v11, %v4180_v37  ;;  %v1866_v18 = vmul.f32 1.442695, %v1822_v41 }
 0x3a8   : > { %3167 = vpow2.f32 %v1846_v32  ;;  %v1816_v22 = vsub.f32 %v3980_v39, %v1745_v34  ;;  %v1749_v11 = vrot.slane %v1724_v30, %v4194_v49 }
 0x3a9   : > { %3169 = vpow2.f32 %v1848_v33  ;;  %v1852_v17 = vmul.f32 1.442695, %v1815_v52  ;;  %v1870_v25 = vmul.f32 1.442695, %v1824_v50  ;;  %v1817_v33 = vsub.f32 %v3986_v1, %v1745_v34 }
 0x3aa   : > { %3171 = vpow2.f32 %v1862_v51  ;;  %v1854_v41 = vmul.f32 1.442695, %v1816_v22  ;;  %v1818_v51 = vsub.f32 %v4002_v19, %v1749_v11  ;;  %v1819_v1 = vsub.f32 %v4019_v13, %v1749_v11 }
 0x3ab   : > { %3173 = vpow2.f32 %v1850_v46  ;;  %v1856_v52 = vmul.f32 1.442695, %v1817_v33  ;;  %v1821_v13 = vsub.f32 %v4004_v27, %v4163_v26 }
 0x3ac   : > { %3175 = vpow2.f32 %v1866_v18  ;;  %v1858_v18 = vmul.f32 1.442695, %v1818_v51 }
 0x3ad   : > { %3177 = vpow2.f32 %v1852_v17  ;;  %v1864_v27 = vmul.f32 1.442695, %v1821_v13 }
 0x3ae   : > { %3179 = vpow2.f32 %v1870_v25  ;;  %v1860_v25 = vmul.f32 1.442695, %v1819_v1 }
 0x3af   : > { %3181 = vpow2.f32 %v1854_v41 }
 0x3b0   : > { %v4186_v9 = vpop.eup %3163  ;;  %3183 = vpow2.f32 %v1856_v52  ;;  %v1823_v52 = vsub.f32 %v4046_v14, %v4171_v24 }
 0x3b1   : > { %v4190_v32 = vpop.eup %3165  ;;  %1939 = vperm.xlu1 %3057, %v4186_v9   ;;  %3185 = vpow2.f32 %v1858_v18 }
 0x3b2   : > { %1942 = vperm.xlu0 %3058, %v4190_v32   ;;  %v4198_v6 = vpop.eup %3167  ;;  %3187 = vpow2.f32 %v1860_v25  ;;  %v1868_v63 = vmul.f32 1.442695, %v1823_v52 }
 0x3b3   : > { %v4203_v10 = vpop.eup %3169 }
 0x3b4   : > { %v4206_v39 = vpop.eup %3171 }
 0x3b5   : > { %1945 = vperm.xlu1 %3057, %v4198_v6   ;;  %v4210_v46 = vpop.eup %3173 }
 0x3b6   : > { %1969 = vperm.xlu0 %3058, %v4206_v39   ;;  %v4218_v50 = vpop.eup %3175 }
 0x3b7   : > { %v4224_v17 = vpop.eup %3177 }
 0x3b8   : > { %v4229_v11 = vpop.eup %3179 }
 0x3b9   : > { %1948 = vperm.xlu1 %3057, %v4203_v10  }
 0x3ba   : > { %1975 = vperm.xlu0 %3058, %v4218_v50  }
 0x3bd   : > { %1951 = vperm.xlu1 %3057, %v4210_v46  }
 0x3be   : > { %v4212_v30 = vpop.xlane.xlu0 %1726  ;;  %1981 = vperm.xlu0 %3058, %v4229_v11  }
 0x3bf   : > { %v1765_v34 = vrot.slane %v4212_v30, %v4143_v8  ;;  %v1769_v19 = vrot.slane %v4212_v30, %v4146_v42  ;;  %v1773_v33 = vrot.slane %v4212_v30, %v4156_v56  ;;  %v1777_v26 = vrot.slane %v4212_v30, %v4176_v47 }
 0x3c0   : > { %v1781_v14 = vrot.slane %v4212_v30, %v4194_v49 }
 0x3c1   : > { %v1827_v22 = vsub.f32 %v4068_v53, %v1765_v34  ;;  %1954 = vperm.xlu1 %3057, %v4224_v17   ;;  %v1829_v41 = vsub.f32 %v4060_v2, %v1769_v19  ;;  %v4235_v53 = vpop.eup %3181  ;;  %v1831_v1 = vsub.f32 %v4076_v55, %v1773_v33  ;;  %v1833_v24 = vsub.f32 %v4072_v62, %v1777_v26 }
 0x3c2   : > { %v4243_v2 = vpop.eup %3183 }
 0x3c3   : > { %v1876_v51 = vmul.f32 1.442695, %v1827_v22  ;;  %v1880_v18 = vmul.f32 1.442695, %v1829_v41  ;;  %v1825_v22 = vsub.f32 %v4035_v28, %v4180_v37  ;;  %v1884_v13 = vmul.f32 1.442695, %v1831_v1  ;;  %v4251_v25 = vpop.eup %3185 }
 0x3c4   : > { %v1826_v41 = vsub.f32 %v4064_v35, %v1765_v34  ;;  %v1785_v28 = vrot.slane %v4212_v30, %v4151_v21  ;;  %v1835_v37 = vsub.f32 %v4105_v45, %v1781_v14  ;;  %v4258_v52 = vpop.eup %3187  ;;  %v1789_v35 = vrot.slane %v4212_v30, %v4160_v16 }
 0x3c5   : > { %1957 = vperm.xlu1 %3057, %v4235_v53   ;;  %3189 = vpow2.f32 %v1876_v51  ;;  %v1872_v55 = vmul.f32 1.442695, %v1825_v22  ;;  %v1888_v51 = vmul.f32 1.442695, %v1833_v24  ;;  %v1830_v22 = vsub.f32 %v4074_v36, %v1773_v33 }
 0x3c6   : > { %3191 = vpow2.f32 %v1864_v27  ;;  %v1828_v27 = vsub.f32 %v4048_v4, %v1769_v19  ;;  %v1836_v34 = vsub.f32 %v4078_v0, %v1785_v28  ;;  %v1892_v45 = vmul.f32 1.442695, %v1835_v37 }
 0x3c7   : > { %3193 = vpow2.f32 %v1880_v18  ;;  %v1793_v19 = vrot.slane %v4212_v30, %v4168_v29  ;;  %v1838_v24 = vsub.f32 %v4109_v20, %v1789_v35  ;;  %v1882_v36 = vmul.f32 1.442695, %v1830_v22 }
 0x3c8   : > { %3195 = vpow2.f32 %v1868_v63  ;;  %v1874_v63 = vmul.f32 1.442695, %v1826_v41  ;;  %v1878_v4 = vmul.f32 1.442695, %v1828_v27  ;;  %v1894_v0 = vmul.f32 1.442695, %v1836_v34 }
 0x3c9   : > { %1960 = vperm.xlu1 %3057, %v4243_v2   ;;  %3197 = vpow2.f32 %v1884_v13  ;;  %v1832_v41 = vsub.f32 %v4070_v23, %v1777_v26  ;;  %v1840_v33 = vsub.f32 %v4125_v38, %v1793_v19  ;;  %v1898_v30 = vmul.f32 1.442695, %v1838_v24 }
 0x3ca   : > { %3199 = vpow2.f32 %v1872_v55  ;;  %v1834_v23 = vsub.f32 %v4094_v61, %v1781_v14  ;;  %v1837_v38 = vsub.f32 %v4092_v15, %v1785_v28  ;;  %v1839_v61 = vsub.f32 %v4121_v12, %v1789_v35 }
 0x3cb   : > { %3201 = vpow2.f32 %v1888_v51  ;;  %v1886_v51 = vmul.f32 1.442695, %v1832_v41  ;;  %v1902_v26 = vmul.f32 1.442695, %v1840_v33  ;;  %v1841_v15 = vsub.f32 %v4132_v3, %v1793_v19 }
 0x3cc   : > { %3203 = vpow2.f32 %v1874_v63  ;;  %v1890_v34 = vmul.f32 1.442695, %v1834_v23  ;;  %v1896_v14 = vmul.f32 1.442695, %v1837_v38  ;;  %v1900_v28 = vmul.f32 1.442695, %v1839_v61 }
 0x3cd   : > { %1963 = vperm.xlu1 %3057, %v4251_v25   ;;  %3205 = vpow2.f32 %v1892_v45  ;;  %v1904_v12 = vmul.f32 1.442695, %v1841_v15 }
 0x3ce   : > { %3207 = vpow2.f32 %v1878_v4 }
 0x3cf   : > { %v4260_v62 = vpop.eup %3189  ;;  %3209 = vpow2.f32 %v1894_v0 }
 0x3d0   : > { %1990 = vperm.xlu0 %3058, %v4260_v62   ;;  %v4268_v1 = vpop.eup %3191  ;;  %3211 = vpow2.f32 %v1882_v36 }
 0x3d1   : > { %1966 = vperm.xlu1 %3057, %v4258_v52   ;;  %v4270_v18 = vpop.eup %3193  ;;  %3213 = vpow2.f32 %v1898_v30 }
 0x3d2   : > { %v4278_v13 = vpop.eup %3195  ;;  %3215 = vpow2.f32 %v1886_v51 }
 0x3d3   : > { %v4280_v55 = vpop.eup %3197  ;;  %3217 = vpow2.f32 %v1902_v26 }
 0x3d4   : > { %1996 = vperm.xlu0 %3058, %v4270_v18   ;;  %v4286_v37 = vpop.eup %3199  ;;  %3219 = vpow2.f32 %v1890_v34 }
 0x3d5   : > { %1972 = vperm.xlu1 %3057, %v4268_v1   ;;  %v4288_v20 = vpop.eup %3201  ;;  %3221 = vpow2.f32 %v1896_v14 }
 0x3d6   : > { %v4293_v27 = vpop.eup %3203  ;;  %3223 = vpow2.f32 %v1900_v28 }
 0x3d7   : > { %v4295_v63 = vpop.eup %3205  ;;  %3225 = vpow2.f32 %v1904_v12 }
 0x3d8   : > { %2002 = vperm.xlu0 %3058, %v4280_v55   ;;  %v4300_v45 = vpop.eup %3207 }
 0x3d9   : > { %1978 = vperm.xlu1 %3057, %v4278_v13   ;;  %v4302_v22 = vpop.eup %3209 }
 0x3da   : > { %4737 = vst [vmem:[#allocation37_spill] sm:$0xff] %v4302_v22  ;;  %v4307_v4 = vpop.eup %3211 }
 0x3db   : > { %v4309_v24 = vpop.eup %3213 }
 0x3dc   : > { %2008 = vperm.xlu0 %3058, %v4288_v20   ;;  %4738 = vst [vmem:[#allocation38_spill] sm:$0xff] %v4309_v24  ;;  %v4314_v0 = vpop.eup %3215 }
 0x3dd   : > { %1984 = vperm.xlu1 %3057, %v4286_v37   ;;  %v4316_v41 = vpop.eup %3217 }
 0x3de   : > { %4739 = vst [vmem:[#allocation39_spill] sm:$0xff] %v4316_v41  ;;  %v4320_v35 = vpop.eup %3219 }
 0x3df   : > { %v4323_v36 = vpop.eup %3221 }
 0x3e0   : > { %2014 = vperm.xlu0 %3058, %v4295_v63   ;;  %v4326_v3 = vpop.eup %3223 }
 0x3e1   : > { %1987 = vperm.xlu1 %3057, %v4293_v27   ;;  %4740 = vst [vmem:[#allocation40_spill] sm:$0xff] %v4326_v3  ;;  %v4329_v19 = vpop.eup %3225 }
 0x3e2   : > { %4741 = vst [vmem:[#allocation41_spill] sm:$0xff] %v4329_v19 }
 0x3e4   : > { %2017 = vperm.xlu0 %3058, %v4302_v22  }
 0x3e5   : > { %1993 = vperm.xlu1 %3057, %v4300_v45  }
 0x3e8   : > { %2023 = vperm.xlu0 %3058, %v4309_v24  }
 0x3e9   : > { %1999 = vperm.xlu1 %3057, %v4307_v4  }
 0x3ec   : > { %2029 = vperm.xlu0 %3058, %v4316_v41  }
 0x3ed   : > { %2005 = vperm.xlu1 %3057, %v4314_v0  }
 0x3f1   : > { %2011 = vperm.xlu1 %3057, %v4320_v35  }
 0x3f5   : > { %2020 = vperm.xlu1 %3057, %v4323_v36  }
 0x3f9   : > { %2026 = vperm.xlu1 %3057, %v4326_v3  }
 0x3fd   : > { %2032 = vperm.xlu1 %3057, %v4329_v19  }
 0x430   : > { %v1940_v33 = vpop.permute.xlu1 %1939 }
 0x431   : > { %v1943_v23 = vpop.permute.xlu0 %1942  ;;  %v2037_v60 = vrot.slane %v1940_v33, %v3995_v54 }
 0x432   : > { %v2041_v43 = vrot.slane %v1943_v23, %v3998_v59 }
 0x434   : > { %v1946_v30 = vpop.permute.xlu1 %1945 }
 0x435   : > { %v1970_v38 = vpop.permute.xlu0 %1969  ;;  %v2046_v44 = vrot.slane %v1946_v30, %v3995_v54  ;;  %v2042_v30 = vsel %vm1561_vm5, %v2041_v43, %v2037_v60 }
 0x438   : > { %v1949_v51 = vpop.permute.xlu1 %1948 }
 0x439   : > { %v1976_v14 = vpop.permute.xlu0 %1975  ;;  %v2050_v31 = vrot.slane %v1949_v51, %v3998_v59 }
 0x43b   : > { %v2051_v24 = vsel %vm1561_vm5, %v2050_v31, %v2046_v44  ;;  %v2091_v44 = vrot.slane %v1976_v14, %v3995_v54 }
 0x43c   : > { %v1952_v26 = vpop.permute.xlu1 %1951  ;;  %v2178_v22 = vsel %vm1698_vm6, %v2051_v24, %v2042_v30 }
 0x43d   : > { %v1982_v28 = vpop.permute.xlu0 %1981  ;;  %v2055_v48 = vrot.slane %v1952_v26, %v3995_v54 }
 0x440   : > { %v1955_v34 = vpop.permute.xlu1 %1954 }
 0x441   : > { %v2059_v58 = vrot.slane %v1955_v34, %v3998_v59 }
 0x443   : > { %v2060_v3 = vsel %vm1561_vm5, %v2059_v58, %v2055_v48 }
 0x444   : > { %v1958_v61 = vpop.permute.xlu1 %1957 }
 0x445   : > { %v2064_v51 = vrot.slane %v1958_v61, %v3995_v54 }
 0x448   : > { %v1961_v15 = vpop.permute.xlu1 %1960 }
 0x449   : > { %v2068_v40 = vrot.slane %v1961_v15, %v3998_v59  ;;  %v2082_v15 = vrot.slane %v1970_v38, %v3995_v54 }
 0x44b   : > { %v2069_v26 = vsel %vm1561_vm5, %v2068_v40, %v2064_v51  ;;  %v2100_v40 = vrot.slane %v1982_v28, %v3995_v54 }
 0x44c   : > { %v1964_v12 = vpop.permute.xlu1 %1963 }
 0x44d   : > { %v2073_v33 = vrot.slane %v1964_v12, %v3995_v54 }
 0x44f   : > { %v4332_v7 = vpop.permute.xlu0 %1990 }
 0x450   : > { %v1967_v5 = vpop.permute.xlu1 %1966 }
 0x451   : > { %v2077_v41 = vrot.slane %v1967_v5, %v3998_v59 }
 0x453   : > { %v1997_v19 = vpop.permute.xlu0 %1996  ;;  %v2078_v31 = vsel %vm1561_vm5, %v2077_v41, %v2073_v33 }
 0x454   : > { %v1973_v57 = vpop.permute.xlu1 %1972 }
 0x455   : > { %v2086_v34 = vrot.slane %v1973_v57, %v3998_v59  ;;  %v2179_v57 = vsel %vm1700_vm7, %v2060_v3, %v2178_v22 }
 0x456   : > { %v2180_v58 = vsel %vm1702_vm8, %v2069_v26, %v2179_v57 }
 0x457   : > { %v2087_v48 = vsel %vm1561_vm5, %v2086_v34, %v2082_v15  ;;  %v2003_v61 = vpop.permute.xlu0 %2002  ;;  %v2181_v38 = vsel %vm1704_vm9, %v2078_v31, %v2180_v58 }
 0x458   : > { %v1979_v23 = vpop.permute.xlu1 %1978  ;;  %v2182_v14 = vsel %vm1706_vm10, %v2087_v48, %v2181_v38  ;;  %v2122_v48 = vrot.slane %v1997_v19, %v3998_v59  ;;  %v2113_v38 = vrot.slane %v4332_v7, %v3998_v59 }
 0x459   : > { %v2095_v5 = vrot.slane %v1979_v23, %v3998_v59 }
 0x45b   : > { %v2096_v43 = vsel %vm1561_vm5, %v2095_v5, %v2091_v44  ;;  %v2009_v34 = vpop.permute.xlu0 %2008 }
 0x45c   : > { %v1985_v60 = vpop.permute.xlu1 %1984  ;;  %v2183_v22 = vsel %vm1708_vm11, %v2096_v43, %v2182_v14 }
 0x45d   : > { %v2104_v24 = vrot.slane %v1985_v60, %v3998_v59  ;;  %v2131_v60 = vrot.slane %v2003_v61, %v3998_v59 }
 0x45f   : > { %v2105_v41 = vsel %vm1561_vm5, %v2104_v24, %v2100_v40  ;;  %v2015_v23 = vpop.permute.xlu0 %2014  ;;  %v2140_v24 = vrot.slane %v2009_v34, %v3998_v59 }
 0x460   : > { %v1988_v3 = vpop.permute.xlu1 %1987  ;;  %v2184_v12 = vsel %vm1710_vm12, %v2105_v41, %v2183_v22  ;;  %v2149_v22 = vrot.slane %v2015_v23, %v3998_v59 }
 0x461   : > { %v2194_v51 = vsel %vm1721_vm13, %v2184_v12, 0.0  ;;  %v2109_v58 = vrot.slane %v1988_v3, %v3995_v54 }
 0x462   : > { %2195 = vadd.xlane.f32.xlu0 %v2194_v51 }
 0x463   : > { %v2018_v15 = vpop.permute.xlu0 %2017  ;;  %v2114_v12 = vsel %vm1561_vm5, %v2113_v38, %v2109_v58 }
 0x464   : > { %v1994_v33 = vpop.permute.xlu1 %1993  ;;  %v2154_v61 = vrot.slane %v2018_v15, %v3995_v54 }
 0x465   : > { %v2118_v5 = vrot.slane %v1994_v33, %v3995_v54 }
 0x467   : > { %v2024_v44 = vpop.permute.xlu0 %2023  ;;  %v2123_v14 = vsel %vm1561_vm5, %v2122_v48, %v2118_v5 }
 0x468   : > { %v2000_v28 = vpop.permute.xlu1 %1999  ;;  %v2185_v7 = vsel %vm1698_vm6, %v2123_v14, %v2114_v12  ;;  %v2163_v34 = vrot.slane %v2024_v44, %v3995_v54 }
 0x469   : > { %v2127_v31 = vrot.slane %v2000_v28, %v3995_v54 }
 0x46b   : > { %v2132_v19 = vsel %vm1561_vm5, %v2131_v60, %v2127_v31  ;;  %v2030_v28 = vpop.permute.xlu0 %2029 }
 0x46c   : > { %v2006_v30 = vpop.permute.xlu1 %2005  ;;  %v2186_v23 = vsel %vm1700_vm7, %v2132_v19, %v2185_v7 }
 0x46d   : > { %v2136_v43 = vrot.slane %v2006_v30, %v3995_v54 }
 0x46f   : > { %v2141_v51 = vsel %vm1561_vm5, %v2140_v24, %v2136_v43 }
 0x470   : > { %v2012_v26 = vpop.permute.xlu1 %2011  ;;  %v2187_v5 = vsel %vm1702_vm8, %v2141_v51, %v2186_v23 }
 0x471   : > { %v2145_v40 = vrot.slane %v2012_v26, %v3995_v54 }
 0x473   : > { %v2150_v30 = vsel %vm1561_vm5, %v2149_v22, %v2145_v40 }
 0x474   : > { %v2021_v57 = vpop.permute.xlu1 %2020  ;;  %v2188_v48 = vsel %vm1704_vm9, %v2150_v30, %v2187_v5 }
 0x475   : > { %v2158_v41 = vrot.slane %v2021_v57, %v3998_v59  ;;  %v2172_v57 = vrot.slane %v2030_v28, %v3995_v54 }
 0x477   : > { %v2159_v26 = vsel %vm1561_vm5, %v2158_v41, %v2154_v61 }
 0x478   : > { %v2027_v3 = vpop.permute.xlu1 %2026  ;;  %v2189_v44 = vsel %vm1706_vm10, %v2159_v26, %v2188_v48 }
 0x479   : > { %v2167_v33 = vrot.slane %v2027_v3, %v3998_v59 }
 0x47b   : > { %v2168_v31 = vsel %vm1561_vm5, %v2167_v33, %v2163_v34 }
 0x47c   : > { %v2033_v15 = vpop.permute.xlu1 %2032  ;;  %v2190_v60 = vsel %vm1708_vm11, %v2168_v31, %v2189_v44 }
 0x47d   : > { %v2176_v58 = vrot.slane %v2033_v15, %v3998_v59 }
 0x47f   : > { %v2177_v43 = vsel %vm1561_vm5, %v2176_v58, %v2172_v57 }
 0x480   : > { %v2191_v40 = vsel %vm1710_vm12, %v2177_v43, %v2190_v60 }
 0x481   : > { %v2197_v38 = vsel %vm1721_vm13, %v2191_v40, 0.0 }
 0x482   : > { %2198 = vadd.xlane.f32.xlu1 %v2197_v38 }
 0x4ef   : > { %v2196_v24 = vpop.xlane.xlu0 %2195 }
 0x4f0   : > { %v2205_v14 = vrot.slane %v2196_v24, %v4143_v8  ;;  %v2209_v54 = vrot.slane %v2196_v24, %v4146_v42  ;;  %v2213_v59 = vrot.slane %v2196_v24, %v4156_v56  ;;  %v2217_v41 = vrot.slane %v2196_v24, %v4176_v47 }
 0x4f1   : > { %v2221_v19 = vrot.slane %v2196_v24, %v4194_v49  ;;  %v2225_v51 = vrot.slane %v2196_v24, %v4151_v21  ;;  %v2229_v28 = vrot.slane %v2196_v24, %v4160_v16  ;;  %v2233_v23 = vrot.slane %v2196_v24, %v4168_v29 }
 0x4f2   : > { %3227 = vrcp.f32 %v2205_v14 }
 0x4f3   : > { %3229 = vrcp.f32 %v2209_v54 }
 0x4f4   : > { %3231 = vrcp.f32 %v2213_v59  ;;  %v4744_v59 = vld [vmem:[#allocation38_spill] sm:$0xff] }
 0x4f5   : > { %3233 = vrcp.f32 %v2217_v41 }
 0x4f6   : > { %3235 = vrcp.f32 %v2221_v19  ;;  %v4746_v19 = vld [vmem:[#allocation39_spill] sm:$0xff] }
 0x4f7   : > { %3237 = vrcp.f32 %v2225_v51 }
 0x4f8   : > { %3239 = vrcp.f32 %v2229_v28 }
 0x4f9   : > { %3241 = vrcp.f32 %v2233_v23  ;;  %v4749_v23 = vld [vmem:[#allocation5_spill] sm:$0xff] }
 0x4fc   : > { %v3228_v22 = vpop.eup %3227 }
 0x4fd   : > { %v2284_v3 = vmul.f32 %v3228_v22, %v4190_v32  ;;  %v2283_v12 = vmul.f32 %v3228_v22, %v4186_v9  ;;  %v3230_v61 = vpop.eup %3229 }
 0x4fe   : > { %v2287_v33 = vmul.f32 %v3230_v61, %v4203_v10  ;;  %v2286_v7 = vmul.f32 %v3230_v61, %v4198_v6  ;;  %v3232_v34 = vpop.eup %3231 }
 0x4ff   : > { %2337 = vperm.xlu1 %3057, %v2284_v3   ;;  %2332 = vperm.xlu0 %3058, %v2283_v12   ;;  %v2290_v32 = vmul.f32 %v3232_v34, %v4224_v17  ;;  %v2289_v9 = vmul.f32 %v3232_v34, %v4210_v46  ;;  %v3234_v30 = vpop.eup %3233  ;;  %v2667_v12 = vld [vmem:[%s302_s19 + $0x8] sm:$0xff] }
 0x500   : > { %v2293_v10 = vmul.f32 %v3234_v30, %v4243_v2  ;;  %v2292_v6 = vmul.f32 %v3234_v30, %v4235_v53  ;;  %v3236_v26 = vpop.eup %3235 }
 0x501   : > { %v2296_v5 = vmul.f32 %v3236_v26, %v4258_v52  ;;  %v2295_v17 = vmul.f32 %v3236_v26, %v4251_v25  ;;  %v3238_v31 = vpop.eup %3237  ;;  %v4751_v26 = vld [vmem:[#allocation7_spill] sm:$0xff] }
 0x502   : > { %v2299_v2 = vmul.f32 %v3238_v31, %v4268_v1  ;;  %v2298_v53 = vmul.f32 %v3238_v31, %v4206_v39  ;;  %v3240_v48 = vpop.eup %3239  ;;  %v4753_v31 = vld [vmem:[#allocation6_spill] sm:$0xff] }
 0x503   : > { %2347 = vperm.xlu1 %3057, %v2287_v33   ;;  %2342 = vperm.xlu0 %3058, %v2286_v7   ;;  %v2302_v25 = vmul.f32 %v3240_v48, %v4278_v13  ;;  %v2301_v58 = vmul.f32 %v3240_v48, %v4218_v50  ;;  %v3242_v44 = vpop.eup %3241 }
 0x504   : > { %v2304_v39 = vmul.f32 %v3242_v44, %v4229_v11 }
 0x507   : > { %2357 = vperm.xlu1 %3057, %v2290_v32   ;;  %2352 = vperm.xlu0 %3058, %v2289_v9   ;;  %v4747_v32 = vld [vmem:[#allocation8_spill] sm:$0xff] }
 0x508   : > { %v4748_v9 = vmax.f32 %v4747_v32, 0.0 }
 0x50b   : > { %2367 = vperm.xlu1 %3057, %v2293_v10   ;;  %2362 = vperm.xlu0 %3058, %v2292_v6   ;;  %v4750_v10 = vmax.f32 %v4749_v23, 0.0 }
 0x50f   : > { %v2199_v46 = vpop.xlane.xlu1 %2198  ;;  %2377 = vperm.xlu1 %3057, %v2296_v5   ;;  %2372 = vperm.xlu0 %3058, %v2295_v17   ;;  %v4752_v5 = vmax.f32 %v4751_v26, 0.0 }
 0x510   : > { %v2237_v15 = vrot.slane %v2199_v46, %v4143_v8  ;;  %v2241_v57 = vrot.slane %v2199_v46, %v4146_v42  ;;  %v2245_v52 = vrot.slane %v2199_v46, %v4156_v56  ;;  %v2249_v8 = vrot.slane %v2199_v46, %v4176_v47 }
 0x511   : > { %v2305_v42 = vmul.f32 %v3242_v44, %v4286_v37  ;;  %v2253_v56 = vrot.slane %v2199_v46, %v4194_v49  ;;  %v2257_v47 = vrot.slane %v2199_v46, %v4151_v21  ;;  %v2261_v49 = vrot.slane %v2199_v46, %v4160_v16 }
 0x512   : > { %3243 = vrcp.f32 %v2237_v15  ;;  %v2265_v21 = vrot.slane %v2199_v46, %v4168_v29  ;;  %v4742_v29 = vld [vmem:[#allocation37_spill] sm:$0xff]  ;;  %v4754_v46 = vmax.f32 %v4753_v31, 0.0  ;;  %v4775_v31 = vld [vmem:[#allocation19_spill] sm:$0xff] }
 0x513   : > { %2387 = vperm.xlu1 %3057, %v2299_v2   ;;  %2382 = vperm.xlu0 %3058, %v2298_v53   ;;  %3245 = vrcp.f32 %v2241_v57 }
 0x514   : > { %3247 = vrcp.f32 %v2245_v52 }
 0x515   : > { %3249 = vrcp.f32 %v2249_v8  ;;  %v4755_v8 = vld [vmem:[#allocation12_spill] sm:$0xff] }
 0x516   : > { %3251 = vrcp.f32 %v2253_v56 }
 0x517   : > { %2397 = vperm.xlu1 %3057, %v2302_v25   ;;  %2392 = vperm.xlu0 %3058, %v2301_v58   ;;  %3253 = vrcp.f32 %v2257_v47  ;;  %v4759_v47 = vld [vmem:[#allocation11_spill] sm:$0xff] }
 0x518   : > { %3255 = vrcp.f32 %v2261_v49 }
 0x519   : > { %3257 = vrcp.f32 %v2265_v21 }
 0x51b   : > { %2407 = vperm.xlu1 %3057, %v2305_v42   ;;  %2402 = vperm.xlu0 %3058, %v2304_v39   ;;  %v4756_v42 = vmax.f32 %v4755_v8, 0.0 }
 0x51c   : > { %v3244_v1 = vpop.eup %3243 }
 0x51d   : > { %v2308_v13 = vmul.f32 %v3244_v1, %v4260_v62  ;;  %v2307_v50 = vmul.f32 %v3244_v1, %v4293_v27  ;;  %v3246_v43 = vpop.eup %3245  ;;  %v4757_v1 = vld [vmem:[#allocation9_spill] sm:$0xff] }
 0x51e   : > { %v2311_v37 = vmul.f32 %v3246_v43, %v4270_v18  ;;  %v2310_v11 = vmul.f32 %v3246_v43, %v4300_v45  ;;  %v3248_v60 = vpop.eup %3247  ;;  %v4758_v56 = vmax.f32 %v4757_v1, 0.0 }
 0x51f   : > { %2417 = vperm.xlu1 %3057, %v2308_v13   ;;  %2412 = vperm.xlu0 %3058, %v2307_v50   ;;  %v2314_v62 = vmul.f32 %v3248_v60, %v4280_v55  ;;  %v2313_v27 = vmul.f32 %v3248_v60, %v4307_v4  ;;  %v3250_v40 = vpop.eup %3249  ;;  %v4761_v60 = vld [vmem:[#allocation10_spill] sm:$0xff] }
 0x520   : > { %v2317_v18 = vmul.f32 %v3250_v40, %v4288_v20  ;;  %v2316_v45 = vmul.f32 %v3250_v40, %v4314_v0  ;;  %v3252_v38 = vpop.eup %3251  ;;  %v4743_v0 = vld [vmem:[#allocation40_spill] sm:$0xff]  ;;  %v4762_v49 = vmax.f32 %v4761_v60, 0.0 }
 0x521   : > { %v2320_v16 = vmul.f32 %v3252_v38, %v4295_v63  ;;  %v2319_v55 = vmul.f32 %v3252_v38, %v4320_v35  ;;  %v3254_v4 = vpop.eup %3253  ;;  %v4745_v63 = vld [vmem:[#allocation41_spill] sm:$0xff] }
 0x522   : > { %v2323_v24 = vmul.f32 %v3254_v4, %v4323_v36  ;;  %v2322_v14 = vmul.f32 %v3254_v4, %v4742_v29  ;;  %v3256_v20 = vpop.eup %3255  ;;  %v2666_v36 = vld [vmem:[%s302_s19] sm:$0xff]  ;;  %v4763_v4 = vld [vmem:[#allocation16_spill] sm:$0xff] }
 0x523   : > { %2427 = vperm.xlu1 %3057, %v2311_v37   ;;  %2422 = vperm.xlu0 %3058, %v2310_v11   ;;  %v2326_v54 = vmul.f32 %v3256_v20, %v4743_v0  ;;  %v2325_v41 = vmul.f32 %v3256_v20, %v4744_v59  ;;  %v3258_v22 = vpop.eup %3257  ;;  %v4760_v37 = vmax.f32 %v4759_v47, 0.0 }
 0x524   : > { %v2329_v35 = vmul.f32 %v3258_v22, %v4745_v63  ;;  %v2328_v3 = vmul.f32 %v3258_v22, %v4746_v19  ;;  %v4767_v22 = vld [vmem:[#allocation15_spill] sm:$0xff]  ;;  %v4769_v19 = vld [vmem:[#allocation14_spill] sm:$0xff] }
 0x525   : > { %v4768_v63 = vmax.f32 %v4767_v22, 0.0 }
 0x527   : > { %2437 = vperm.xlu1 %3057, %v2314_v62   ;;  %2432 = vperm.xlu0 %3058, %v2313_v27  }
 0x52b   : > { %2447 = vperm.xlu1 %3057, %v2317_v18   ;;  %2442 = vperm.xlu0 %3058, %v2316_v45  }
 0x52f   : > { %2457 = vperm.xlu1 %3057, %v2320_v16   ;;  %2452 = vperm.xlu0 %3058, %v2319_v55  }
 0x533   : > { %2467 = vperm.xlu1 %3057, %v2323_v24   ;;  %2462 = vperm.xlu0 %3058, %v2322_v14   ;;  %v4764_v24 = vmax.f32 %v4763_v4, 0.0  ;;  %v4765_v14 = vld [vmem:[#allocation13_spill] sm:$0xff] }
 0x534   : > { %v4766_v20 = vmax.f32 %v4765_v14, 0.0  ;;  %v4783_v14 = vld [vmem:[#allocation24_spill] sm:$0xff] }
 0x537   : > { %2477 = vperm.xlu1 %3057, %v2326_v54   ;;  %2472 = vperm.xlu0 %3058, %v2325_v41  }
 0x53b   : > { %2487 = vperm.xlu1 %3057, %v2329_v35   ;;  %2482 = vperm.xlu0 %3058, %v2328_v3   ;;  %v4770_v3 = vmax.f32 %v4769_v19, 0.0 }
 0x53f   : > { %2702 = vrot.lane.b32.xlu0 %v2666_v36, %s3324_s17  ;;  %2704 = vrot.lane.b32.xlu1 %v2667_v12, %s3324_s17  ;;  %s288_s17 = sand.u32 1, %s3313_s25  }
 0x540   : > { %s2806_s20 = sshll.u32 %s288_s17, 4  ;;  %s4585_s28 = scalar_lea.sflag [#allocation3], %s288_s17 }
 0x541   : > { %s4561_s21 = scalar_lea.vmem [#allocation2], %s2806_s20 }
 0x542   : > { %s2728_s22 = sshll.u32 %s4561_s21, 4  ;;  %s4572_s22 = int_to_ptr.vmem [resolvable:$true] %s2728_s22 }
 0x543   : > { %s3259_s13 = scalar_lea.vmem %s4572_s22, 256  ;;  %p3266_p1 = scmp.lt.s32.totalorder %s4572_s22, %s3264_s15 }
 0x544   : > { %p3260_p12 = scmp.ne.s32.totalorder %s4572_s22, %s3259_s13  ;;  %p3267_p2 = scmp.lt.s32.totalorder %s3265_s16, %s3259_s13 }
 0x546   : > { %p3261_p13 = pnand %p3260_p12, %p3407_p5  ;;  %p3268_p3 = por %p3267_p2, %p3266_p1 }
 0x548   : > { %p3262_p0 = pneg %p3261_p13 }
 0x54a   : > { %p3269_p4 = pnand %p3268_p3, %p3262_p0 }
 0x57e   : > { %v2338_v61 = vpop.permute.xlu1 %2337  ;;  %v2333_v51 = vpop.permute.xlu0 %2332 }
 0x57f   : > { %v2491_v30 = vmul.f32 %v2338_v61, %v4748_v9  ;;  %v2490_v6 = vmul.f32 %v2333_v51, %v4750_v10  ;;  %v4773_v9 = vld [vmem:[#allocation17_spill] sm:$0xff] }
 0x581   : > { %v2523_v53 = vsel %vm788_vm2, %v2491_v30, 0.0  ;;  %v2522_v48 = vsel %vm788_vm2, %v2490_v6, 0.0  ;;  %v4774_v30 = vmax.f32 %v4773_v9, 0.0 }
 0x582   : > { %v2348_v33 = vpop.permute.xlu1 %2347  ;;  %v2343_v7 = vpop.permute.xlu0 %2342  ;;  %v2524_v50 = vadd.f32 %v2523_v53, %v2522_v48 }
 0x583   : > { %v2493_v17 = vmul.f32 %v2348_v33, %v4752_v5  ;;  %v2492_v15 = vmul.f32 %v2343_v7, %v4754_v46  ;;  %v4776_v46 = vmax.f32 %v4775_v31, 0.0 }
 0x584   : > { %v2525_v45 = vrot.slane %v2524_v50, 4 }
 0x585   : > { %v2532_v52 = vsel %vm788_vm2, %v2493_v17, 0.0  ;;  %v2531_v25 = vsel %vm788_vm2, %v2492_v15, 0.0 }
 0x586   : > { %v2358_v34 = vpop.permute.xlu1 %2357  ;;  %v2353_v28 = vpop.permute.xlu0 %2352  ;;  %v2533_v43 = vadd.f32 %v2532_v52, %v2531_v25  ;;  %v2526_v12 = vadd.f32 %v2525_v45, %v2524_v50 }
 0x587   : > { %v2495_v39 = vmul.f32 %v2358_v34, %v4756_v42  ;;  %v2494_v13 = vmul.f32 %v2353_v28, %v4758_v56  ;;  %v4771_v34 = vld [vmem:[#allocation20_spill] sm:$0xff] }
 0x588   : > { %v2534_v38 = vrot.slane %v2533_v43, 4  ;;  %v4772_v28 = vmax.f32 %v4771_v34, 0.0  ;;  %v2527_v48 = vrot.slane %v2526_v12, 2 }
 0x589   : > { %v2541_v21 = vsel %vm788_vm2, %v2495_v39, 0.0  ;;  %v2540_v18 = vsel %vm788_vm2, %v2494_v13, 0.0 }
 0x58a   : > { %v2368_v57 = vpop.permute.xlu1 %2367  ;;  %v2363_v2 = vpop.permute.xlu0 %2362  ;;  %v2542_v54 = vadd.f32 %v2541_v21, %v2540_v18  ;;  %v2535_v61 = vadd.f32 %v2534_v38, %v2533_v43  ;;  %v2528_v60 = vadd.f32 %v2527_v48, %v2526_v12  ;;  %v4779_v18 = vld [vmem:[#allocation23_spill] sm:$0xff] }
 0x58b   : > { %v2497_v11 = vmul.f32 %v2368_v57, %v4760_v37  ;;  %v2496_v62 = vmul.f32 %v2363_v2, %v4762_v49  ;;  %v4777_v57 = vld [vmem:[#allocation18_spill] sm:$0xff]  ;;  %v4780_v45 = vmax.f32 %v4779_v18, 0.0 }
 0x58c   : > { %v2543_v10 = vrot.slane %v2542_v54, 4  ;;  %v4778_v2 = vmax.f32 %v4777_v57, 0.0  ;;  %v2536_v25 = vrot.slane %v2535_v61, 2 }
 0x58d   : > { %v2550_v16 = vsel %vm788_vm2, %v2497_v11, 0.0  ;;  %v2549_v55 = vsel %vm788_vm2, %v2496_v62, 0.0 }
 0x58e   : > { %v2378_v58 = vpop.permute.xlu1 %2377  ;;  %v2373_v44 = vpop.permute.xlu0 %2372  ;;  %v2551_v51 = vadd.f32 %v2550_v16, %v2549_v55  ;;  %v2544_v42 = vadd.f32 %v2543_v10, %v2542_v54  ;;  %v2537_v49 = vadd.f32 %v2536_v25, %v2535_v61  ;;  %v4781_v16 = vld [vmem:[#allocation21_spill] sm:$0xff]  ;;  %v4785_v54 = vld [vmem:[#allocation22_spill] sm:$0xff] }
 0x58f   : > { %v2499_v29 = vmul.f32 %v2378_v58, %v4764_v24  ;;  %v2498_v0 = vmul.f32 %v2373_v44, %v4766_v20  ;;  %v4782_v55 = vmax.f32 %v4781_v16, 0.0  ;;  %v4784_v20 = vmax.f32 %v4783_v14, 0.0 }
 0x590   : > { %v2552_v58 = vrot.slane %v2551_v51, 4  ;;  %v2545_v62 = vrot.slane %v2544_v42, 2  ;;  %v2538_v19 = vrot.slane %v2537_v49, 1 }
 0x591   : > { %v2559_v33 = vsel %vm788_vm2, %v2499_v29, 0.0  ;;  %v2558_v7 = vsel %vm788_vm2, %v2498_v0, 0.0 }
 0x592   : > { %v2388_v27 = vpop.permute.xlu1 %2387  ;;  %v2383_v40 = vpop.permute.xlu0 %2382  ;;  %v2560_v52 = vadd.f32 %v2559_v33, %v2558_v7  ;;  %v2553_v37 = vadd.f32 %v2552_v58, %v2551_v51  ;;  %v4787_v7 = vld [vmem:[#allocation28_spill] sm:$0xff]  ;;  %v4791_v58 = vld [vmem:[#allocation27_spill] sm:$0xff] }
 0x593   : > { %v2501_v35 = vmul.f32 %v2388_v27, %v4768_v63  ;;  %v2500_v36 = vmul.f32 %v2383_v40, %v4770_v3  ;;  %v2546_v3 = vadd.f32 %v2545_v62, %v2544_v42  ;;  %v4788_v34 = vmax.f32 %v4787_v7, 0.0  ;;  %v4793_v42 = vld [vmem:[#allocation25_spill] sm:$0xff] }
 0x594   : > { %v2561_v43 = vrot.slane %v2560_v52, 4  ;;  %v2554_v22 = vrot.slane %v2553_v37, 2 }
 0x595   : > { %v2568_v5 = vsel %vm788_vm2, %v2501_v35, 0.0  ;;  %v2567_v17 = vsel %vm788_vm2, %v2500_v36, 0.0  ;;  %v2529_v35 = vrot.slane %v2528_v60, 1 }
 0x596   : > { %v2398_v59 = vpop.permute.xlu1 %2397  ;;  %v2393_v41 = vpop.permute.xlu0 %2392  ;;  %v2569_v39 = vadd.f32 %v2568_v5, %v2567_v17  ;;  %v2562_v24 = vadd.f32 %v2561_v43, %v2560_v52  ;;  %v2555_v5 = vadd.f32 %v2554_v22, %v2553_v37 }
 0x597   : > { %v2503_v32 = vmul.f32 %v2398_v59, %v4772_v28  ;;  %v2502_v23 = vmul.f32 %v2393_v41, %v4774_v30  ;;  %v4786_v59 = vmax.f32 %v4785_v54, 0.0 }
 0x598   : > { %v2570_v27 = vrot.slane %v2569_v39, 4 }
 0x599   : > { %v2577_v44 = vsel %vm788_vm2, %v2503_v32, 0.0  ;;  %v2576_v8 = vsel %vm788_vm2, %v2502_v23, 0.0  ;;  %v4789_v32 = vld [vmem:[#allocation26_spill] sm:$0xff]  ;;  %v2563_v23 = vrot.slane %v2562_v24, 2 }
 0x59a   : > { %v2408_v6 = vpop.permute.xlu1 %2407  ;;  %v2403_v26 = vpop.permute.xlu0 %2402  ;;  %v2578_v47 = vadd.f32 %v2577_v44, %v2576_v8  ;;  %v2571_v36 = vadd.f32 %v2570_v27, %v2569_v39  ;;  %v4790_v9 = vmax.f32 %v4789_v32, 0.0  ;;  %v4792_v44 = vmax.f32 %v4791_v58, 0.0 }
 0x59b   : > { %v2505_v15 = vmul.f32 %v2408_v6, %v4776_v46  ;;  %v2504_v53 = vmul.f32 %v2403_v26, %v4778_v2  ;;  %v4794_v39 = vmax.f32 %v4793_v42, 0.0 }
 0x59c   : > { %v2579_v29 = vrot.slane %v2578_v47, 4  ;;  %v2572_v57 = vrot.slane %v2571_v36, 2 }
 0x59d   : > { %v2586_v1 = vsel %vm788_vm2, %v2505_v15, 0.0  ;;  %v2585_v56 = vsel %vm788_vm2, %v2504_v53, 0.0  ;;  %v2547_v15 = vrot.slane %v2546_v3, 1 }
 0x59e   : > { %v2418_v13 = vpop.permute.xlu1 %2417  ;;  %v2413_v50 = vpop.permute.xlu0 %2412  ;;  %v2587_v11 = vadd.f32 %v2586_v1, %v2585_v56  ;;  %v2580_v10 = vadd.f32 %v2579_v29, %v2578_v47  ;;  %v2530_v56 = vadd.f32 %v2529_v35, %v2528_v60  ;;  %v2556_v47 = vrot.slane %v2555_v5, 1 }
 0x59f   : > { %v2507_v0 = vmul.f32 %v2418_v13, %v4784_v20  ;;  %v2506_v41 = vmul.f32 %v2413_v50, %v4786_v59  ;;  %v2539_v13 = vadd.f32 %v2538_v19, %v2537_v49  ;;  %v2564_v50 = vadd.f32 %v2563_v23, %v2562_v24  ;;  %v4797_v49 = vld [vmem:[#allocation30_spill] sm:$0xff] }
 0x5a0   : > { %v2588_v63 = vrot.slane %v2587_v11, 4  ;;  %v2581_v43 = vrot.slane %v2580_v10, 2  ;;  %v2548_v27 = vadd.f32 %v2547_v15, %v2546_v3  ;;  %v4798_v24 = vmax.f32 %v4797_v49, 0.0 }
 0x5a1   : > { %v2595_v6 = vsel %vm788_vm2, %v2507_v0, 0.0  ;;  %v2594_v26 = vsel %vm788_vm2, %v2506_v41, 0.0  ;;  %v2684_v20 = vsel %vm1698_vm6, %v2539_v13, %v2530_v56  ;;  %v2565_v0 = vrot.slane %v2564_v50, 1 }
 0x5a2   : > { %v2428_v40 = vpop.permute.xlu1 %2427  ;;  %v2423_v21 = vpop.permute.xlu0 %2422  ;;  %v2589_v17 = vadd.f32 %v2588_v63, %v2587_v11  ;;  %v2596_v52 = vadd.f32 %v2595_v6, %v2594_v26  ;;  %v2582_v54 = vadd.f32 %v2581_v43, %v2580_v10  ;;  %v2557_v41 = vadd.f32 %v2556_v47, %v2555_v5 }
 0x5a3   : > { %v2509_v38 = vmul.f32 %v2428_v40, %v4780_v45  ;;  %v2508_v4 = vmul.f32 %v2423_v21, %v4782_v55  ;;  %v2573_v40 = vadd.f32 %v2572_v57, %v2571_v36  ;;  %v2685_v19 = vsel %vm1700_vm7, %v2548_v27, %v2684_v20 }
 0x5a4   : > { %v2590_v37 = vrot.slane %v2589_v17, 2  ;;  %v2597_v16 = vrot.slane %v2596_v52, 4  ;;  %v2566_v10 = vadd.f32 %v2565_v0, %v2564_v50  ;;  %v2583_v6 = vrot.slane %v2582_v54, 1 }
 0x5a5   : > { %v2604_v51 = vsel %vm788_vm2, %v2509_v38, 0.0  ;;  %v2603_v33 = vsel %vm788_vm2, %v2508_v4, 0.0  ;;  %v4795_v4 = vld [vmem:[#allocation32_spill] sm:$0xff]  ;;  %v2574_v3 = vrot.slane %v2573_v40, 1  ;;  %v2686_v15 = vsel %vm1702_vm8, %v2557_v41, %v2685_v19 }
 0x5a6   : > { %v2438_v12 = vpop.permute.xlu1 %2437  ;;  %v2433_v61 = vpop.permute.xlu0 %2432  ;;  %v2605_v2 = vadd.f32 %v2604_v51, %v2603_v33  ;;  %v4796_v29 = vmax.f32 %v4795_v4, 0.0  ;;  %v2591_v22 = vadd.f32 %v2590_v37, %v2589_v17  ;;  %v2598_v33 = vadd.f32 %v2597_v16, %v2596_v52 }
 0x5a7   : > { %v2511_v28 = vmul.f32 %v2438_v12, %v4788_v34  ;;  %v2510_v30 = vmul.f32 %v2433_v61, %v4790_v9  ;;  %v4799_v34 = vld [vmem:[#allocation31_spill] sm:$0xff]  ;;  %v4801_v9 = vld [vmem:[#allocation29_spill] sm:$0xff]  ;;  %v2575_v57 = vadd.f32 %v2574_v3, %v2573_v40  ;;  %v2584_v50 = vadd.f32 %v2583_v6, %v2582_v54 }
 0x5a8   : > { %v2606_v21 = vrot.slane %v2605_v2, 4  ;;  %v2592_v17 = vrot.slane %v2591_v22, 1  ;;  %v2599_v58 = vrot.slane %v2598_v33, 2  ;;  %v2687_v37 = vsel %vm1704_vm9, %v2566_v10, %v2686_v15 }
 0x5a9   : > { %v2613_v31 = vsel %vm788_vm2, %v2511_v28, 0.0  ;;  %v2612_v46 = vsel %vm788_vm2, %v2510_v30, 0.0  ;;  %v4800_v28 = vmax.f32 %v4799_v34, 0.0  ;;  %v4802_v30 = vmax.f32 %v4801_v9, 0.0 }
 0x5aa   : > { %v2448_v53 = vpop.permute.xlu1 %2447  ;;  %v2443_v48 = vpop.permute.xlu0 %2442  ;;  %v2614_v25 = vadd.f32 %v2613_v31, %v2612_v46  ;;  %v2607_v36 = vadd.f32 %v2606_v21, %v2605_v2  ;;  %v2593_v40 = vadd.f32 %v2592_v17, %v2591_v22  ;;  %v2600_v4 = vadd.f32 %v2599_v58, %v2598_v33 }
 0x5ab   : > { %v2513_v8 = vmul.f32 %v2448_v53, %v4792_v44  ;;  %v2512_v1 = vmul.f32 %v2443_v48, %v4794_v39 }
 0x5ac   : > { %v2615_v55 = vrot.slane %v2614_v25, 4  ;;  %v2608_v2 = vrot.slane %v2607_v36, 2 }
 0x5ad   : > { %v2622_v11 = vsel %vm788_vm2, %v2513_v8, 0.0  ;;  %v2621_v62 = vsel %vm788_vm2, %v2512_v1, 0.0  ;;  %v4803_v8 = vld [vmem:[#allocation36_spill] sm:$0xff]  ;;  %v4805_v1 = vld [vmem:[#allocation34_spill] sm:$0xff] }
 0x5ae   : > { %v2623_v18 = vadd.f32 %v2622_v11, %v2621_v62  ;;  %v2458_v45 = vpop.permute.xlu1 %2457  ;;  %v2453_v38 = vpop.permute.xlu0 %2452  ;;  %v2616_v7 = vadd.f32 %v2615_v55, %v2614_v25  ;;  %v4804_v42 = vmax.f32 %v4803_v8, 0.0  ;;  %v4806_v56 = vmax.f32 %v4805_v1, 0.0 }
 0x5af   : > { %v2515_v60 = vmul.f32 %v2458_v45, %v4796_v29  ;;  %v2514_v14 = vmul.f32 %v2453_v38, %v4798_v24  ;;  %v2609_v21 = vadd.f32 %v2608_v2, %v2607_v36  ;;  %v2688_v55 = vsel %vm1706_vm10, %v2575_v57, %v2687_v37 }
 0x5b0   : > { %v2624_v59 = vrot.slane %v2623_v18, 4  ;;  %v2617_v44 = vrot.slane %v2616_v7, 2  ;;  %v2689_v22 = vsel %vm1708_vm11, %v2584_v50, %v2688_v55 }
 0x5b1   : > { %v2631_v63 = vsel %vm788_vm2, %v2515_v60, 0.0  ;;  %v2630_v35 = vsel %vm788_vm2, %v2514_v14, 0.0  ;;  %v4807_v60 = vld [vmem:[#allocation35_spill] sm:$0xff]  ;;  %v4809_v14 = vld [vmem:[#allocation33_spill] sm:$0xff]  ;;  %v2690_v3 = vsel %vm1710_vm12, %v2593_v40, %v2689_v22  ;;  %v2610_v36 = vrot.slane %v2609_v21, 1 }
 0x5b2   : > { %v2632_v12 = vadd.f32 %v2631_v63, %v2630_v35  ;;  %v2468_v61 = vpop.permute.xlu1 %2467  ;;  %v2463_v51 = vpop.permute.xlu0 %2462  ;;  %v2625_v26 = vadd.f32 %v2624_v59, %v2623_v18  ;;  %v2618_v29 = vadd.f32 %v2617_v44, %v2616_v7  ;;  %v4808_v49 = vmax.f32 %v4807_v60, 0.0 }
 0x5b3   : > { %v2517_v32 = vmul.f32 %v2468_v61, %v4800_v28  ;;  %v2516_v23 = vmul.f32 %v2463_v51, %v4802_v30  ;;  %v4810_v20 = vmax.f32 %v4809_v14, 0.0  ;;  %v2601_v7 = vrot.slane %v2600_v4, 1 }
 0x5b4   : > { %v2633_v5 = vrot.slane %v2632_v12, 4  ;;  %v2626_v43 = vrot.slane %v2625_v26, 2  ;;  %v2619_v34 = vrot.slane %v2618_v29, 1  ;;  %v2611_v6 = vadd.f32 %v2610_v36, %v2609_v21 }
 0x5b5   : > { %v2640_v31 = vsel %vm788_vm2, %v2517_v32, 0.0  ;;  %v2639_v46 = vsel %vm788_vm2, %v2516_v23, 0.0 }
 0x5b6   : > { %v2634_v53 = vadd.f32 %v2633_v5, %v2632_v12  ;;  %v2641_v48 = vadd.f32 %v2640_v31, %v2639_v46  ;;  %v2478_v52 = vpop.permute.xlu1 %2477  ;;  %v2473_v25 = vpop.permute.xlu0 %2472  ;;  %v2627_v54 = vadd.f32 %v2626_v43, %v2625_v26  ;;  %v2620_v31 = vadd.f32 %v2619_v34, %v2618_v29 }
 0x5b7   : > { %v2519_v39 = vmul.f32 %v2478_v52, %v4804_v42  ;;  %v2518_v13 = vmul.f32 %v2473_v25, %v4806_v56  ;;  %v2602_v46 = vadd.f32 %v2601_v7, %v2600_v4 }
 0x5b8   : > { %v2642_v47 = vrot.slane %v2641_v48, 4  ;;  %v2635_v11 = vrot.slane %v2634_v53, 2  ;;  %v2628_v32 = vrot.slane %v2627_v54, 1 }
 0x5b9   : > { %v2649_v62 = vsel %vm788_vm2, %v2519_v39, 0.0  ;;  %v2648_v27 = vsel %vm788_vm2, %v2518_v13, 0.0 }
 0x5ba   : > { %v2643_v18 = vadd.f32 %v2642_v47, %v2641_v48  ;;  %v2650_v45 = vadd.f32 %v2649_v62, %v2648_v27  ;;  %v2488_v38 = vpop.permute.xlu1 %2487  ;;  %v2483_v16 = vpop.permute.xlu0 %2482  ;;  %v2636_v63 = vadd.f32 %v2635_v11, %v2634_v53  ;;  %v2629_v15 = vadd.f32 %v2628_v32, %v2627_v54 }
 0x5bb   : > { %v2521_v24 = vmul.f32 %v2488_v38, %v4808_v49  ;;  %v2520_v0 = vmul.f32 %v2483_v16, %v4810_v20  ;;  %v2691_v48 = vsel %vm1698_vm6, %v2611_v6, %v2602_v46 }
 0x5bc   : > { %v2644_v59 = vrot.slane %v2643_v18, 2  ;;  %v2651_v41 = vrot.slane %v2650_v45, 4  ;;  %v2637_v10 = vrot.slane %v2636_v63, 1  ;;  %v2692_v58 = vsel %vm1700_vm7, %v2620_v31, %v2691_v48 }
 0x5bd   : > { %v2658_v35 = vsel %vm788_vm2, %v2521_v24, 0.0  ;;  %v2657_v19 = vsel %vm788_vm2, %v2520_v0, 0.0  ;;  %v2693_v42 = vsel %vm1702_vm8, %v2629_v15, %v2692_v58 }
 0x5be   : > { %v2645_v12 = vadd.f32 %v2644_v59, %v2643_v18  ;;  %v2652_v61 = vadd.f32 %v2651_v41, %v2650_v45  ;;  %v2659_v51 = vadd.f32 %v2658_v35, %v2657_v19  ;;  %v2703_v33 = vpop.permute.xlu0 %2702  ;;  %v2638_v53 = vadd.f32 %v2637_v10, %v2636_v63  ;;  %v2705_v1 = vpop.permute.xlu1 %2704 }
 0x5bf   : > { %v2708_v28 = vsel %vm788_vm2, %v2690_v3, %v2703_v33 }
 0x5c0   : > { %v2653_v9 = vrot.slane %v2652_v61, 2  ;;  %v2660_v30 = vrot.slane %v2659_v51, 4  ;;  %v2710_v23 = vsel %vm909_vm4, %v2708_v28, 0.0  ;;  %v2646_v26 = vrot.slane %v2645_v12, 1 }
 0x5c1   : > { %2712 = vst [vmem:[%s4561_s21] sm:$0xff] %v2710_v23  ;;  %v2694_v39 = vsel %vm1704_vm9, %v2638_v53, %v2693_v42 }
 0x5c2   : > { %v2654_v5 = vadd.f32 %v2653_v9, %v2652_v61  ;;  %v2661_v17 = vadd.f32 %v2660_v30, %v2659_v51  ;;  %v2647_v52 = vadd.f32 %v2646_v26, %v2645_v12 }
 0x5c4   : > { %v2655_v57 = vrot.slane %v2654_v5, 1  ;;  %v2662_v2 = vrot.slane %v2661_v17, 2  ;;  %v2695_v13 = vsel %vm1706_vm10, %v2647_v52, %v2694_v39 }
 0x5c6   : > { %v2663_v25 = vadd.f32 %v2662_v2, %v2661_v17  ;;  %v2656_v44 = vadd.f32 %v2655_v57, %v2654_v5 }
 0x5c8   : > { %v2664_v8 = vrot.slane %v2663_v25, 1  ;;  %v2696_v50 = vsel %vm1708_vm11, %v2656_v44, %v2695_v13 }
 0x5ca   : > { %v2665_v56 = vadd.f32 %v2664_v8, %v2663_v25 }
 0x5cc   : > { %v2697_v43 = vsel %vm1710_vm12, %v2665_v56, %v2696_v50 }
 0x5cd   : > { %v2709_v47 = vsel %vm788_vm2, %v2697_v43, %v2705_v1 }
 0x5ce   : > { %v2711_v37 = vsel %vm909_vm4, %v2709_v47, 0.0 }
 0x5cf   : > { %2713 = vst [vmem:[%s4561_s21 + $0x8] sm:$0xff] %v2711_v37 }
 0x5d0   : > { %3272 = shalt.err (!%p3269_p4)
}
 0x5d1   : > { %s3273_s18 = scalar_lea.hbm %s4579_s9, 256  ;;  %s3277_s20 = scalar_lea.hbm %s4633_s7, 512 }
 0x5d2   : > { %p3274_p7 = scmp.ne.s32.totalorder %s4579_s9, %s3273_s18  ;;  %p3278_p10 = scmp.lt.u32.totalorder %s4579_s9, %s4633_s7 }
 0x5d3   : > { %p3279_p11 = scmp.lt.u32.totalorder %s3277_s20, %s3273_s18  ;;  %p3281_p13 = scmp.lt.u32.totalorder %s3273_s18, %s4579_s9 }
 0x5d4   : > { %p3275_p8 = pnand %p3274_p7, %p3407_p5 }
 0x5d5   : > { %p3280_p12 = por %p3279_p11, %p3278_p10 }
 0x5d6   : > { %p3276_p9 = pneg %p3275_p8 }
 0x5d7   : > { %p3282_p0 = por %p3281_p13, %p3280_p12 }
 0x5d9   : > { %p3283_p1 = pnand %p3282_p0, %p3276_p9 }
 0x5db   : > { %3286 = shalt.err (!%p3283_p1)
}
 0x5dc   : > { %s3327_s29 = smov 128   ;;  %s3328_s8 = smov 8  }
 0x5dd   : > { %3013 = dma.vmem_to_hbm [thread:$0]  (%p3407_p5), %s4572_s22, 256, %s4579_s9, %s4585_s28, %s3327_s29, %s3327_s29, %s3328_s8  }
 0x5de PF: > { %p3019_p2 = scmp.ge.s32.totalorder %s3321_s27, 2  ;;  %s2743_s13 = sand.u32 1, %s3309_s24  }
 0x5df   : > { %s2744_s14 = scalar_lea.sflag [#allocation3], %s2743_s13 }
 0x5e0   : > { %p3016_p3 = pnand %p3019_p2, %p3411_p6 }
 0x5e2   : > { %3304 = dma.done.wait (!%p3016_p3), %s2744_s14, 256  }
 0x5e3   : > { %3306 = vsyncadd (!%p3016_p3), %s2744_s14, 4294967040  ;;  %p17_p4 = scmp.ge.s32.totalorder %s3394_s30, 4   ;;  %s4811_s24 = smov %s3313_s25 }
 0x5e4   : > { %s4812_s25 = smov %s3317_s26  ;;  %s4813_s26 = smov %s3405_s10 }
 0x5e5   : > { %s4814_s27 = smov %s3394_s30  ;;  %19 = sbr.rel (!%p17_p4) target bundleno = 3 (0x3), region = 86 }
 0x5ec   :  { %2749 = vsyncpa [#allocation3], 1 }
 0x5ed   :  { %2751 = vsyncpa [#allocation3 + $0x1], 1 }

</bundles_post_ra>
